<compile_context>
chip_gen: v6e
topology: v6e:2x2x1
jax: 0.10.0
libtpu: 0.0.40
codegen_flags: <defaults>
</compile_context>

<pallas_src>
import functools
import math

import jax
import jax.numpy as jnp
from jax.experimental import pallas as pl
from jax.experimental.pallas import tpu as pltpu

_LANE = 128


def _mlp(xk, w1_ref, b1_ref, w2_ref, b2_ref):
    """MLP body in feature-major layout.

    xk: (8, T) tile.  Row 0 is the passthrough column (zero-weighted in w1p),
    rows 1:4 are the features, rows 4:8 are zero padding (clean K=8 for MXU).
    Returns y = fc2(relu(fc1(x0))) of shape (3, T), f32.
    """
    # fc1 on the MXU: (64, 8) @ (8, T).  Zero columns of w1p kill the
    # passthrough row and the K padding, so this equals fc1(x[:, 1:4]).
    h = jnp.dot(w1_ref[...], xk, preferred_element_type=jnp.float32) + b1_ref[...]
    h = jnp.maximum(h, 0.0)
    # fc2 on the MXU: (3, 64) @ (64, T), f32 accumulation.
    y = jnp.dot(w2_ref[...], h, preferred_element_type=jnp.float32) + b2_ref[...]
    return y                              # (3, T)


def _stats_kernel(x_ref, w1_ref, b1_ref, w2_ref, b2_ref, stats_ref, *, n_valid):
    """Phase 1: per-tile partial min/max/sum of the MLP output."""
    tile_n = x_ref.shape[1]
    i = pl.program_id(0)

    y = _mlp(x_ref[...], w1_ref, b1_ref, w2_ref, b2_ref)    # (3, T)

    # Mask lanes past the true batch size (the last tile may be padded).
    lane = jax.lax.broadcasted_iota(jnp.int32, (1, tile_n), 1)
    valid = (i * tile_n + lane) < n_valid
    pinf = jnp.float32(jnp.inf)
    ninf = jnp.float32(-jnp.inf)

    xs, ys, ps = y[0:1, :], y[1:2, :], y[2:3, :]
    min_xs = jnp.min(jnp.where(valid, xs, pinf))
    max_xs = jnp.max(jnp.where(valid, xs, ninf))
    min_ys = jnp.min(jnp.where(valid, ys, pinf))
    max_ys = jnp.max(jnp.where(valid, ys, ninf))
    sum_ps = jnp.sum(jnp.where(valid, ps, 0.0))

    # Full-width (128-lane) row stores of broadcast scalars.
    stats_ref[0:1, :] = jnp.full((1, _LANE), min_xs, jnp.float32)
    stats_ref[1:2, :] = jnp.full((1, _LANE), max_xs, jnp.float32)
    stats_ref[2:3, :] = jnp.full((1, _LANE), min_ys, jnp.float32)
    stats_ref[3:4, :] = jnp.full((1, _LANE), max_ys, jnp.float32)
    stats_ref[4:5, :] = jnp.full((1, _LANE), sum_ps, jnp.float32)
    stats_ref[5:8, :] = jnp.zeros((3, _LANE), jnp.float32)


def _apply_kernel(params_ref, x_ref, w1_ref, b1_ref, w2_ref, b2_ref, o_ref):
    """Phase 2: recompute y per tile, normalize with global stats, write output."""
    xk = x_ref[...]                                          # (8, T)
    y = _mlp(xk, w1_ref, b1_ref, w2_ref, b2_ref)             # (3, T)

    min_xs = params_ref[0]
    scale0 = params_ref[1]
    min_ys = params_ref[2]
    scale1 = params_ref[3]
    mean_p = params_ref[4]

    # Direct full-width row stores into the (4, T) output block (no lane concat).
    o_ref[0:1, :] = xk[0:1, :]
    o_ref[1:2, :] = jnp.floor((y[0:1, :] - min_xs) * scale0)
    o_ref[2:3, :] = jnp.floor((y[1:2, :] - min_ys) * scale1)
    o_ref[3:4, :] = (y[2:3, :] > mean_p).astype(jnp.float32)


def fd_net_forward_fm(x_fm, w1, b1, w2, b2, *, tile_n=16384):
    """Feature-major forward: x_fm is (4, N), returns (4, N).

    Use this entry point when the caller already keeps data feature-major:
    it avoids the two HBM transpose passes of the (N, 4) wrapper entirely.
    w1: (64, 3), b1: (64, 1)   (torch nn.Linear layout: (out, in))
    w2: (3, 64), b2: (3, 1)
    """
    f, n = x_fm.shape
    assert f == 4

    # Tile sizing:
    #   * multiple of 128 (lane width), capped at 32768,
    #   * clamped so there are >=2 grid tiles whenever N allows (megacore),
    #   * at the 16384 default the dominant (64, tile_n) f32 hidden activation
    #     is 4 MiB, keeping the per-tile VMEM footprint (<~10 MiB with
    #     double-buffered I/O) inside every generation's default scoped VMEM.
    tile_n = max(_LANE, (min(int(tile_n), 32768) // _LANE) * _LANE)
    half = max(_LANE, (((n + 1) // 2 + _LANE - 1) // _LANE) * _LANE)
    tile_n = min(tile_n, half)
    n_tiles = pl.cdiv(n, tile_n)
    n_pad = n_tiles * tile_n

    # (8, n_pad): row 0 = passthrough, rows 1:4 = features, rows 4:8 = zeros so
    # the fc1 contraction dim is a clean, sublane-aligned K=8.
    xk = jnp.pad(x_fm.astype(jnp.float32), ((0, 4), (0, n_pad - n)))

    # fc1 weight laid out to match: column 0 (passthrough) and 4:8 (pad) zero.
    w1p = jnp.zeros((64, 8), jnp.float32).at[:, 1:4].set(w1.astype(jnp.float32))

    weight_specs = [
        pl.BlockSpec((64, 8), lambda i: (0, 0)),   # w1p
        pl.BlockSpec((64, 1), lambda i: (0, 0)),   # b1
        pl.BlockSpec((3, 64), lambda i: (0, 0)),   # w2
        pl.BlockSpec((3, 1), lambda i: (0, 0)),    # b2
    ]
    parallel = pltpu.CompilerParams(dimension_semantics=("parallel",))

    # --- Phase 1: per-tile partial stats ------------------------------------
    stats = pl.pallas_call(
        functools.partial(_stats_kernel, n_valid=n),
        out_shape=jax.ShapeDtypeStruct((8, n_tiles * _LANE), jnp.float32),
        grid=(n_tiles,),
        in_specs=[pl.BlockSpec((8, tile_n), lambda i: (0, i))] + weight_specs,
        out_specs=pl.BlockSpec((8, _LANE), lambda i: (0, i)),
        compiler_params=parallel,
    )(xk, w1p, b1, w2, b2)

    # --- Tiny XLA reduction of per-tile stats to 5 scalars -------------------
    s = stats.reshape(8, n_tiles, _LANE)[:, :, 0]   # (8, n_tiles)
    min_xs = jnp.min(s[0])
    max_xs = jnp.max(s[1])
    min_ys = jnp.min(s[2])
    max_ys = jnp.max(s[3])
    mean_p = jnp.sum(s[4]) / jnp.float32(n)
    # NOTE: like the PyTorch reference, a constant column means (max-min)==0
    # and the normalized column becomes inf/nan (same hazard, kept as-is).
    scale0 = jnp.float32(239.0) / (max_xs - min_xs)
    scale1 = jnp.float32(179.0) / (max_ys - min_ys)
    params = jnp.stack(
        [min_xs, scale0, min_ys, scale1, mean_p,
         jnp.float32(0.0), jnp.float32(0.0), jnp.float32(0.0)])

    # --- Phase 2: normalize + assemble output --------------------------------
    out_fm = pl.pallas_call(
        _apply_kernel,
        out_shape=jax.ShapeDtypeStruct((4, n_pad), jnp.float32),
        grid=(n_tiles,),
        in_specs=[pl.BlockSpec(memory_space=pltpu.MemorySpace.SMEM)]
                 + [pl.BlockSpec((8, tile_n), lambda i: (0, i))]
                 + weight_specs,
        out_specs=pl.BlockSpec((4, tile_n), lambda i: (0, i)),
        compiler_params=parallel,
    )(params, xk, w1p, b1, w2, b2)

    return out_fm[:, :n]


def fd_net_forward(x, w1, b1, w2, b2, *, tile_n=16384):
    """Module-faithful forward: x is (N, 4), returns (N, 4).

    The transposes here are the only remaining layout passes; callers able to
    keep data feature-major should use fd_net_forward_fm directly.
    """
    out_fm = fd_net_forward_fm(jnp.transpose(x), w1, b1, w2, b2, tile_n=tile_n)
    return jnp.transpose(out_fm)


def init_params(key):
    """Deterministic init mimicking torch.nn.Linear default U[-1/sqrt(fan_in), +]."""
    k1, k2, k3, k4 = jax.random.split(key, 4)
    bound1 = 1.0 / math.sqrt(3.0)    # fc1: in_features = 3
    bound2 = 1.0 / math.sqrt(64.0)   # fc2: in_features = 64
    w1 = jax.random.uniform(k1, (64, 3), jnp.float32, -bound1, bound1)
    b1 = jax.random.uniform(k2, (64, 1), jnp.float32, -bound1, bound1)
    w2 = jax.random.uniform(k3, (3, 64), jnp.float32, -bound2, bound2)
    b2 = jax.random.uniform(k4, (3, 1), jnp.float32, -bound2, bound2)
    return w1, b1, w2, b2


def ref_forward(x, w1, b1, w2, b2):
    """Pure-JAX reference with the PyTorch formulation (row-major)."""
    x0 = x[:, 1:]
    h = jnp.maximum(x0 @ w1.T + b1[:, 0], 0.0)
    y = h @ w2.T + b2[:, 0]
    xs, ys, ps = y[:, 0], y[:, 1], y[:, 2]
    c0 = jnp.floor((xs - xs.min()) / (xs.max() - xs.min()) * 239.0)
    c1 = jnp.floor((ys - ys.min()) / (ys.max() - ys.min()) * 179.0)
    c2 = (ps > ps.mean()).astype(jnp.float32)
    return jnp.concatenate([x[:, :1], c0[:, None], c1[:, None], c2[:, None]], axis=1)


if __name__ == "__main__":
    key = jax.random.PRNGKey(0)
    kp, kx = jax.random.split(key)
    w1, b1, w2, b2 = init_params(kp)

    N = 2000   # not a multiple of the tile size: exercises padding, masking, 2-tile grid
    x = jax.random.normal(kx, (N, 4), dtype=jnp.float32)

    fwd = jax.jit(functools.partial(fd_net_forward, tile_n=16384))
    out = jax.block_until_ready(fwd(x, w1, b1, w2, b2))
    assert out.shape == (N, 4)

    ref_out = ref_forward(x, w1, b1, w2, b2)

    # Integer-tolerant comparison: floor() after an affine transform can flip a
    # value by exactly 1.0 when MXU/VPU accumulation order differs by an ulp,
    # and the `> mean` threshold can flip only on (near-)exact ties.
    assert jnp.allclose(out[:, 0], ref_out[:, 0], atol=1e-6), "passthrough column mismatch"
    assert float(jnp.max(jnp.abs(out[:, 1] - ref_out[:, 1]))) <= 1.0, "col1 off by >1"
    assert float(jnp.max(jnp.abs(out[:, 2] - ref_out[:, 2]))) <= 1.0, "col2 off by >1"
    assert float(jnp.mean(out[:, 3] != ref_out[:, 3])) <= 0.01, "col3 threshold mismatch"

    print("KERNEL_OK")
</pallas_src>

<mosaic_0001>
module attributes {stable_mosaic.version = 11 : i64} {
  func.func @_stats_kernel(%arg0: i32, %arg1: memref<8x1024xf32, #tpu.memory_space<vmem>>, %arg2: memref<64x8xf32, #tpu.memory_space<vmem>>, %arg3: memref<64x1xf32, #tpu.memory_space<vmem>>, %arg4: memref<3x64xf32, #tpu.memory_space<vmem>>, %arg5: memref<3x1xf32, #tpu.memory_space<vmem>>, %arg6: memref<8x128xf32, #tpu.memory_space<vmem>>) attributes {dimension_semantics = [#tpu.dimension_semantics<parallel>], iteration_bounds = array<i64: 2>, scalar_prefetch = 0 : i64, scratch_operands = 0 : i64, tpu.core_type = #tpu.core_type<tc>, window_params = [{transform_indices = @transform_0, window_bounds = array<i64: 8, 1024>}, {pipeline_mode = #tpu.pipeline_mode<synchronous>, transform_indices = @transform_1, window_bounds = array<i64: 64, 8>}, {pipeline_mode = #tpu.pipeline_mode<synchronous>, transform_indices = @transform_2, window_bounds = array<i64: 64, 1>}, {pipeline_mode = #tpu.pipeline_mode<synchronous>, transform_indices = @transform_3, window_bounds = array<i64: 3, 64>}, {pipeline_mode = #tpu.pipeline_mode<synchronous>, transform_indices = @transform_4, window_bounds = array<i64: 3, 1>}, {transform_indices = @transform_5, window_bounds = array<i64: 8, 128>}]} {
    %c0 = arith.constant 0 : index
    %c0_0 = arith.constant 0 : index
    %0 = vector.load %arg1[%c0, %c0_0] : memref<8x1024xf32, #tpu.memory_space<vmem>>, vector<8x1024xf32>
    %c0_1 = arith.constant 0 : index
    %c0_2 = arith.constant 0 : index
    %1 = vector.load %arg2[%c0_1, %c0_2] : memref<64x8xf32, #tpu.memory_space<vmem>>, vector<64x8xf32>
    %cst = arith.constant dense<0.000000e+00> : vector<64x1024xf32>
    %2 = tpu.matmul %1, %0, %cst {dimension_numbers = #tpu.dot_dimension_numbers<[1], [0], [0], [1], [0, 0, 1, 1], [], []>} : vector<64x8xf32>, vector<8x1024xf32>, vector<64x1024xf32> -> vector<64x1024xf32>
    %c0_3 = arith.constant 0 : index
    %c0_4 = arith.constant 0 : index
    %3 = vector.load %arg3[%c0_3, %c0_4] : memref<64x1xf32, #tpu.memory_space<vmem>>, vector<64x1xf32>
    %4 = vector.broadcast %3 : vector<64x1xf32> to vector<64x1024xf32>
    %5 = arith.addf %2, %4 : vector<64x1024xf32>
    %cst_5 = arith.constant 0.000000e+00 : f32
    %6 = vector.broadcast %cst_5 : f32 to vector<64x1024xf32>
    %7 = arith.maximumf %5, %6 : vector<64x1024xf32>
    %c0_6 = arith.constant 0 : index
    %c0_7 = arith.constant 0 : index
    %8 = vector.load %arg4[%c0_6, %c0_7] : memref<3x64xf32, #tpu.memory_space<vmem>>, vector<3x64xf32>
    %cst_8 = arith.constant dense<0.000000e+00> : vector<3x1024xf32>
    %9 = tpu.matmul %8, %7, %cst_8 {dimension_numbers = #tpu.dot_dimension_numbers<[1], [0], [0], [1], [0, 0, 1, 1], [], []>} : vector<3x64xf32>, vector<64x1024xf32>, vector<3x1024xf32> -> vector<3x1024xf32>
    %c0_9 = arith.constant 0 : index
    %c0_10 = arith.constant 0 : index
    %10 = vector.load %arg5[%c0_9, %c0_10] : memref<3x1xf32, #tpu.memory_space<vmem>>, vector<3x1xf32>
    %11 = vector.broadcast %10 : vector<3x1xf32> to vector<3x1024xf32>
    %12 = arith.addf %9, %11 : vector<3x1024xf32>
    %13 = tpu.iota {dimensions = array<i32: 1>} : vector<1x1024xi32>
    %c1024_i32 = arith.constant 1024 : i32
    %14 = arith.muli %arg0, %c1024_i32 : i32
    %15 = vector.broadcast %14 : i32 to vector<1x1024xi32>
    %16 = arith.addi %15, %13 : vector<1x1024xi32>
    %c2000_i32 = arith.constant 2000 : i32
    %17 = vector.broadcast %c2000_i32 : i32 to vector<1x1024xi32>
    %18 = arith.cmpi slt, %16, %17 : vector<1x1024xi32>
    %19 = vector.extract_strided_slice %12 {offsets = [0, 0], sizes = [1, 1024], strides = [1, 1]} : vector<3x1024xf32> to vector<1x1024xf32>
    %20 = vector.extract_strided_slice %12 {offsets = [1, 0], sizes = [1, 1024], strides = [1, 1]} : vector<3x1024xf32> to vector<1x1024xf32>
    %21 = vector.extract_strided_slice %12 {offsets = [2, 0], sizes = [1, 1024], strides = [1, 1]} : vector<3x1024xf32> to vector<1x1024xf32>
    %cst_11 = arith.constant 0x7F800000 : f32
    %22 = vector.broadcast %cst_11 : f32 to vector<1x1024xf32>
    %23 = arith.select %18, %19, %22 : vector<1x1024xi1>, vector<1x1024xf32>
    %24 = vector.shape_cast %23 : vector<1x1024xf32> to vector<1x1x1024xf32>
    %cst_12 = arith.constant dense<0x7F800000> : vector<1xf32>
    %25 = vector.multi_reduction <minimumf>, %24, %cst_12 [1, 2] : vector<1x1x1024xf32> to vector<1xf32>
    %26 = vector.shape_cast %25 : vector<1xf32> to vector<1x1x1xf32>
    %27 = vector.extract %26[0, 0, 0] : f32 from vector<1x1x1xf32>
    %cst_13 = arith.constant 0xFF800000 : f32
    %28 = vector.broadcast %cst_13 : f32 to vector<1x1024xf32>
    %29 = arith.select %18, %19, %28 : vector<1x1024xi1>, vector<1x1024xf32>
    %30 = vector.shape_cast %29 : vector<1x1024xf32> to vector<1x1x1024xf32>
    %cst_14 = arith.constant dense<0xFF800000> : vector<1xf32>
    %31 = vector.multi_reduction <maximumf>, %30, %cst_14 [1, 2] : vector<1x1x1024xf32> to vector<1xf32>
    %32 = vector.shape_cast %31 : vector<1xf32> to vector<1x1x1xf32>
    %33 = vector.extract %32[0, 0, 0] : f32 from vector<1x1x1xf32>
    %cst_15 = arith.constant 0x7F800000 : f32
    %34 = vector.broadcast %cst_15 : f32 to vector<1x1024xf32>
    %35 = arith.select %18, %20, %34 : vector<1x1024xi1>, vector<1x1024xf32>
    %36 = vector.shape_cast %35 : vector<1x1024xf32> to vector<1x1x1024xf32>
    %cst_16 = arith.constant dense<0x7F800000> : vector<1xf32>
    %37 = vector.multi_reduction <minimumf>, %36, %cst_16 [1, 2] : vector<1x1x1024xf32> to vector<1xf32>
    %38 = vector.shape_cast %37 : vector<1xf32> to vector<1x1x1xf32>
    %39 = vector.extract %38[0, 0, 0] : f32 from vector<1x1x1xf32>
    %cst_17 = arith.constant 0xFF800000 : f32
    %40 = vector.broadcast %cst_17 : f32 to vector<1x1024xf32>
    %41 = arith.select %18, %20, %40 : vector<1x1024xi1>, vector<1x1024xf32>
    %42 = vector.shape_cast %41 : vector<1x1024xf32> to vector<1x1x1024xf32>
    %cst_18 = arith.constant dense<0xFF800000> : vector<1xf32>
    %43 = vector.multi_reduction <maximumf>, %42, %cst_18 [1, 2] : vector<1x1x1024xf32> to vector<1xf32>
    %44 = vector.shape_cast %43 : vector<1xf32> to vector<1x1x1xf32>
    %45 = vector.extract %44[0, 0, 0] : f32 from vector<1x1x1xf32>
    %cst_19 = arith.constant 0.000000e+00 : f32
    %46 = vector.broadcast %cst_19 : f32 to vector<1x1024xf32>
    %47 = arith.select %18, %21, %46 : vector<1x1024xi1>, vector<1x1024xf32>
    %48 = vector.shape_cast %47 : vector<1x1024xf32> to vector<1x1x1024xf32>
    %cst_20 = arith.constant dense<0.000000e+00> : vector<1xf32>
    %49 = vector.multi_reduction <add>, %48, %cst_20 [1, 2] : vector<1x1x1024xf32> to vector<1xf32>
    %50 = vector.shape_cast %49 : vector<1xf32> to vector<1x1x1xf32>
    %51 = vector.extract %50[0, 0, 0] : f32 from vector<1x1x1xf32>
    %52 = vector.broadcast %27 : f32 to vector<1x128xf32>
    %c0_21 = arith.constant 0 : index
    %c0_22 = arith.constant 0 : index
    %53 = vector.load %arg6[%c0_21, %c0_22] : memref<8x128xf32, #tpu.memory_space<vmem>>, vector<1x128xf32>
    tpu.vector_store %arg6[%c0_21, %c0_22], %52 {strides = array<i32>} : memref<8x128xf32, #tpu.memory_space<vmem>>, vector<1x128xf32>,
    %54 = vector.broadcast %33 : f32 to vector<1x128xf32>
    %c1 = arith.constant 1 : index
    %c0_23 = arith.constant 0 : index
    %55 = vector.load %arg6[%c1, %c0_23] : memref<8x128xf32, #tpu.memory_space<vmem>>, vector<1x128xf32>
    tpu.vector_store %arg6[%c1, %c0_23], %54 {strides = array<i32>} : memref<8x128xf32, #tpu.memory_space<vmem>>, vector<1x128xf32>,
    %56 = vector.broadcast %39 : f32 to vector<1x128xf32>
    %c2 = arith.constant 2 : index
    %c0_24 = arith.constant 0 : index
    %57 = vector.load %arg6[%c2, %c0_24] : memref<8x128xf32, #tpu.memory_space<vmem>>, vector<1x128xf32>
    tpu.vector_store %arg6[%c2, %c0_24], %56 {strides = array<i32>} : memref<8x128xf32, #tpu.memory_space<vmem>>, vector<1x128xf32>,
    %58 = vector.broadcast %45 : f32 to vector<1x128xf32>
    %c3 = arith.constant 3 : index
    %c0_25 = arith.constant 0 : index
    %59 = vector.load %arg6[%c3, %c0_25] : memref<8x128xf32, #tpu.memory_space<vmem>>, vector<1x128xf32>
    tpu.vector_store %arg6[%c3, %c0_25], %58 {strides = array<i32>} : memref<8x128xf32, #tpu.memory_space<vmem>>, vector<1x128xf32>,
    %60 = vector.broadcast %51 : f32 to vector<1x128xf32>
    %c4 = arith.constant 4 : index
    %c0_26 = arith.constant 0 : index
    %61 = vector.load %arg6[%c4, %c0_26] : memref<8x128xf32, #tpu.memory_space<vmem>>, vector<1x128xf32>
    tpu.vector_store %arg6[%c4, %c0_26], %60 {strides = array<i32>} : memref<8x128xf32, #tpu.memory_space<vmem>>, vector<1x128xf32>,
    %cst_27 = arith.constant 0.000000e+00 : f32
    %62 = vector.broadcast %cst_27 : f32 to vector<3x128xf32>
    %c5 = arith.constant 5 : index
    %c0_28 = arith.constant 0 : index
    %63 = vector.load %arg6[%c5, %c0_28] : memref<8x128xf32, #tpu.memory_space<vmem>>, vector<3x128xf32>
    tpu.vector_store %arg6[%c5, %c0_28], %62 {strides = array<i32>} : memref<8x128xf32, #tpu.memory_space<vmem>>, vector<3x128xf32>,
    return
  }
  func.func @transform_0(%arg0: i32) -> (i32, i32) {
    %c0_i32 = arith.constant 0 : i32
    %c0_i32_0 = arith.constant 0 : i32
    return %c0_i32, %arg0 : i32, i32
  }
  func.func @transform_1(%arg0: i32) -> (i32, i32) {
    %c0_i32 = arith.constant 0 : i32
    %c0_i32_0 = arith.constant 0 : i32
    %c0_i32_1 = arith.constant 0 : i32
    return %c0_i32, %c0_i32_0 : i32, i32
  }
  func.func @transform_2(%arg0: i32) -> (i32, i32) {
    %c0_i32 = arith.constant 0 : i32
    %c0_i32_0 = arith.constant 0 : i32
    %c0_i32_1 = arith.constant 0 : i32
    return %c0_i32, %c0_i32_0 : i32, i32
  }
  func.func @transform_3(%arg0: i32) -> (i32, i32) {
    %c0_i32 = arith.constant 0 : i32
    %c0_i32_0 = arith.constant 0 : i32
    %c0_i32_1 = arith.constant 0 : i32
    return %c0_i32, %c0_i32_0 : i32, i32
  }
  func.func @transform_4(%arg0: i32) -> (i32, i32) {
    %c0_i32 = arith.constant 0 : i32
    %c0_i32_0 = arith.constant 0 : i32
    %c0_i32_1 = arith.constant 0 : i32
    return %c0_i32, %c0_i32_0 : i32, i32
  }
  func.func @transform_5(%arg0: i32) -> (i32, i32) {
    %c0_i32 = arith.constant 0 : i32
    %c0_i32_0 = arith.constant 0 : i32
    return %c0_i32, %arg0 : i32, i32
  }
}

module attributes {stable_mosaic.version = 11 : i64} {
  func.func @_apply_kernel(%arg0: i32, %arg1: memref<8xf32, #tpu.memory_space<smem>>, %arg2: memref<8x1024xf32, #tpu.memory_space<vmem>>, %arg3: memref<64x8xf32, #tpu.memory_space<vmem>>, %arg4: memref<64x1xf32, #tpu.memory_space<vmem>>, %arg5: memref<3x64xf32, #tpu.memory_space<vmem>>, %arg6: memref<3x1xf32, #tpu.memory_space<vmem>>, %arg7: memref<4x1024xf32, #tpu.memory_space<vmem>>) attributes {dimension_semantics = [#tpu.dimension_semantics<parallel>], iteration_bounds = array<i64: 2>, scalar_prefetch = 0 : i64, scratch_operands = 0 : i64, tpu.core_type = #tpu.core_type<tc>, window_params = [{transform_indices = @transform_0, window_bounds = array<i64: 8>}, {transform_indices = @transform_1, window_bounds = array<i64: 8, 1024>}, {pipeline_mode = #tpu.pipeline_mode<synchronous>, transform_indices = @transform_2, window_bounds = array<i64: 64, 8>}, {pipeline_mode = #tpu.pipeline_mode<synchronous>, transform_indices = @transform_3, window_bounds = array<i64: 64, 1>}, {pipeline_mode = #tpu.pipeline_mode<synchronous>, transform_indices = @transform_4, window_bounds = array<i64: 3, 64>}, {pipeline_mode = #tpu.pipeline_mode<synchronous>, transform_indices = @transform_5, window_bounds = array<i64: 3, 1>}, {transform_indices = @transform_6, window_bounds = array<i64: 4, 1024>}]} {
    %c0 = arith.constant 0 : index
    %c0_0 = arith.constant 0 : index
    %0 = vector.load %arg2[%c0, %c0_0] : memref<8x1024xf32, #tpu.memory_space<vmem>>, vector<8x1024xf32>
    %c0_1 = arith.constant 0 : index
    %c0_2 = arith.constant 0 : index
    %1 = vector.load %arg3[%c0_1, %c0_2] : memref<64x8xf32, #tpu.memory_space<vmem>>, vector<64x8xf32>
    %cst = arith.constant dense<0.000000e+00> : vector<64x1024xf32>
    %2 = tpu.matmul %1, %0, %cst {dimension_numbers = #tpu.dot_dimension_numbers<[1], [0], [0], [1], [0, 0, 1, 1], [], []>} : vector<64x8xf32>, vector<8x1024xf32>, vector<64x1024xf32> -> vector<64x1024xf32>
    %c0_3 = arith.constant 0 : index
    %c0_4 = arith.constant 0 : index
    %3 = vector.load %arg4[%c0_3, %c0_4] : memref<64x1xf32, #tpu.memory_space<vmem>>, vector<64x1xf32>
    %4 = vector.broadcast %3 : vector<64x1xf32> to vector<64x1024xf32>
    %5 = arith.addf %2, %4 : vector<64x1024xf32>
    %cst_5 = arith.constant 0.000000e+00 : f32
    %6 = vector.broadcast %cst_5 : f32 to vector<64x1024xf32>
    %7 = arith.maximumf %5, %6 : vector<64x1024xf32>
    %c0_6 = arith.constant 0 : index
    %c0_7 = arith.constant 0 : index
    %8 = vector.load %arg5[%c0_6, %c0_7] : memref<3x64xf32, #tpu.memory_space<vmem>>, vector<3x64xf32>
    %cst_8 = arith.constant dense<0.000000e+00> : vector<3x1024xf32>
    %9 = tpu.matmul %8, %7, %cst_8 {dimension_numbers = #tpu.dot_dimension_numbers<[1], [0], [0], [1], [0, 0, 1, 1], [], []>} : vector<3x64xf32>, vector<64x1024xf32>, vector<3x1024xf32> -> vector<3x1024xf32>
    %c0_9 = arith.constant 0 : index
    %c0_10 = arith.constant 0 : index
    %10 = vector.load %arg6[%c0_9, %c0_10] : memref<3x1xf32, #tpu.memory_space<vmem>>, vector<3x1xf32>
    %11 = vector.broadcast %10 : vector<3x1xf32> to vector<3x1024xf32>
    %12 = arith.addf %9, %11 : vector<3x1024xf32>
    %c0_11 = arith.constant 0 : index
    %13 = memref.load %arg1[%c0_11] : memref<8xf32, #tpu.memory_space<smem>>
    %c1 = arith.constant 1 : index
    %14 = memref.load %arg1[%c1] : memref<8xf32, #tpu.memory_space<smem>>
    %c2 = arith.constant 2 : index
    %15 = memref.load %arg1[%c2] : memref<8xf32, #tpu.memory_space<smem>>
    %c3 = arith.constant 3 : index
    %16 = memref.load %arg1[%c3] : memref<8xf32, #tpu.memory_space<smem>>
    %c4 = arith.constant 4 : index
    %17 = memref.load %arg1[%c4] : memref<8xf32, #tpu.memory_space<smem>>
    %18 = vector.extract_strided_slice %0 {offsets = [0, 0], sizes = [1, 1024], strides = [1, 1]} : vector<8x1024xf32> to vector<1x1024xf32>
    %c0_12 = arith.constant 0 : index
    %c0_13 = arith.constant 0 : index
    %19 = vector.load %arg7[%c0_12, %c0_13] : memref<4x1024xf32, #tpu.memory_space<vmem>>, vector<1x1024xf32>
    tpu.vector_store %arg7[%c0_12, %c0_13], %18 {strides = array<i32>} : memref<4x1024xf32, #tpu.memory_space<vmem>>, vector<1x1024xf32>,
    %20 = vector.extract_strided_slice %12 {offsets = [0, 0], sizes = [1, 1024], strides = [1, 1]} : vector<3x1024xf32> to vector<1x1024xf32>
    %21 = vector.broadcast %13 : f32 to vector<1x1024xf32>
    %22 = arith.subf %20, %21 : vector<1x1024xf32>
    %23 = vector.broadcast %14 : f32 to vector<1x1024xf32>
    %24 = arith.mulf %22, %23 : vector<1x1024xf32>
    %25 = math.floor %24 : vector<1x1024xf32>
    %c1_14 = arith.constant 1 : index
    %c0_15 = arith.constant 0 : index
    %26 = vector.load %arg7[%c1_14, %c0_15] : memref<4x1024xf32, #tpu.memory_space<vmem>>, vector<1x1024xf32>
    tpu.vector_store %arg7[%c1_14, %c0_15], %25 {strides = array<i32>} : memref<4x1024xf32, #tpu.memory_space<vmem>>, vector<1x1024xf32>,
    %27 = vector.extract_strided_slice %12 {offsets = [1, 0], sizes = [1, 1024], strides = [1, 1]} : vector<3x1024xf32> to vector<1x1024xf32>
    %28 = vector.broadcast %15 : f32 to vector<1x1024xf32>
    %29 = arith.subf %27, %28 : vector<1x1024xf32>
    %30 = vector.broadcast %16 : f32 to vector<1x1024xf32>
    %31 = arith.mulf %29, %30 : vector<1x1024xf32>
    %32 = math.floor %31 : vector<1x1024xf32>
    %c2_16 = arith.constant 2 : index
    %c0_17 = arith.constant 0 : index
    %33 = vector.load %arg7[%c2_16, %c0_17] : memref<4x1024xf32, #tpu.memory_space<vmem>>, vector<1x1024xf32>
    tpu.vector_store %arg7[%c2_16, %c0_17], %32 {strides = array<i32>} : memref<4x1024xf32, #tpu.memory_space<vmem>>, vector<1x1024xf32>,
    %34 = vector.extract_strided_slice %12 {offsets = [2, 0], sizes = [1, 1024], strides = [1, 1]} : vector<3x1024xf32> to vector<1x1024xf32>
    %35 = vector.broadcast %17 : f32 to vector<1x1024xf32>
    %36 = arith.cmpf ogt, %34, %35 : vector<1x1024xf32>
    %37 = arith.extui %36 : vector<1x1024xi1> to vector<1x1024xi32>
    %38 = arith.sitofp %37 : vector<1x1024xi32> to vector<1x1024xf32>
    %c3_18 = arith.constant 3 : index
    %c0_19 = arith.constant 0 : index
    %39 = vector.load %arg7[%c3_18, %c0_19] : memref<4x1024xf32, #tpu.memory_space<vmem>>, vector<1x1024xf32>
    tpu.vector_store %arg7[%c3_18, %c0_19], %38 {strides = array<i32>} : memref<4x1024xf32, #tpu.memory_space<vmem>>, vector<1x1024xf32>,
    return
  }
  func.func @transform_0(%arg0: i32) -> i32 {
    %c0_i32 = arith.constant 0 : i32
    %c0_i32_0 = arith.constant 0 : i32
    return %c0_i32 : i32
  }
  func.func @transform_1(%arg0: i32) -> (i32, i32) {
    %c0_i32 = arith.constant 0 : i32
    %c0_i32_0 = arith.constant 0 : i32
    return %c0_i32, %arg0 : i32, i32
  }
  func.func @transform_2(%arg0: i32) -> (i32, i32) {
    %c0_i32 = arith.constant 0 : i32
    %c0_i32_0 = arith.constant 0 : i32
    %c0_i32_1 = arith.constant 0 : i32
    return %c0_i32, %c0_i32_0 : i32, i32
  }
  func.func @transform_3(%arg0: i32) -> (i32, i32) {
    %c0_i32 = arith.constant 0 : i32
    %c0_i32_0 = arith.constant 0 : i32
    %c0_i32_1 = arith.constant 0 : i32
    return %c0_i32, %c0_i32_0 : i32, i32
  }
  func.func @transform_4(%arg0: i32) -> (i32, i32) {
    %c0_i32 = arith.constant 0 : i32
    %c0_i32_0 = arith.constant 0 : i32
    %c0_i32_1 = arith.constant 0 : i32
    return %c0_i32, %c0_i32_0 : i32, i32
  }
  func.func @transform_5(%arg0: i32) -> (i32, i32) {
    %c0_i32 = arith.constant 0 : i32
    %c0_i32_0 = arith.constant 0 : i32
    %c0_i32_1 = arith.constant 0 : i32
    return %c0_i32, %c0_i32_0 : i32, i32
  }
  func.func @transform_6(%arg0: i32) -> (i32, i32) {
    %c0_i32 = arith.constant 0 : i32
    %c0_i32_0 = arith.constant 0 : i32
    return %c0_i32, %arg0 : i32, i32
  }
}

</mosaic_0001>

<bundles_post_ra>
// kernel: fd_net_forward.2
= control target key start
LH: loop header
LB: loop body
LE: loop exit
PB: predicated region body
PF: predicated region fallthrough
CT: control target
= control target key end

     0   :  { %s1495_s18 = smov 0   ;;  %s1960_s0 = inlined_call_operand.vmem [shape: f32[8,2048], index: 0, kind: input, shape index: {}]   ;;  %s1961_s1 = inlined_call_operand.vmem [shape: f32[64,8], index: 1, kind: input, shape index: {}]   ;;  %s1962_s2 = inlined_call_operand.vmem [shape: f32[64,1], index: 2, kind: input, shape index: {}]   ;;  %s1963_s3 = inlined_call_operand.vmem [shape: f32[3,64], index: 3, kind: input, shape index: {}]   ;;  %s1964_s4 = inlined_call_operand.vmem [shape: f32[3,1], index: 4, kind: input, shape index: {}]   ;;  %s1965_s5 = inlined_call_operand.vmem [shape: f32[8,256], index: 5, kind: output, shape index: {}]  }
   0x1 LB: > { %s1501_s19 = sadd.s32 4294967295, %s1461_s18   ;;  %p1390_p0 = scmp.ge.s32.totalorder %s1461_s18, 1  ;;  %s1461_s18 = sphi %s1495_s18, %s15_s18  }
   0x2   : > { %p188_p1 = scmp.lt.s32.totalorder %s1461_s18, 3 }
   0x4   : > { %p189_p2 = pnand %p1390_p0, %p188_p1 }
   0x5   : > { %s1391_s20 = sshll.u32 (!%p189_p2), %s1501_s19, 3  ;;  %s1430_s13 = sshll.u32 (!%p189_p2), %s1501_s19, 10 }
   0x6   : > { %192 = sbr.rel (%p189_p2) target bundleno = 712 (0x2c8), region = 40  ;;  %p216_p3 = scmp.lt.s32.totalorder (!%p189_p2), %s1391_s20, 15 }
   0x7   : > { %p221_p4 = scmp.lt.s32.totalorder (!%p189_p2), %s1501_s19, 1 }
   0xb   : > { %v1463_v0 = vmov 0.0   ;;  %v1464_v1 = vmov 0   ;;  %v246_v2 = vld [vmem:[%s1962_s2 + $0x28] sm:$0xff]  ;;  %s1967_s20 = smov (!%p216_p3, %s1391_s20), 15  ;;  %v248_v3 = vld [vmem:[%s1962_s2 + $0x38] sm:$0xff]  ;;  %v245_v4 = vld [vmem:[%s1962_s2 + $0x20] sm:$0xff] }
   0xc   : > { %378 = vmatprep.mubr.f32.mxu0 %v1463_v0  ;;  %491 = vmatprep.mubr.f32.mxu1 %v1463_v0  ;;  %s1392_s27 = sshll.u32 %s1967_s20, 3  ;;  %v1523_v5 = vld [vmem:[%s1961_s1] sm:$0xff]  ;;  %vm289_vm0 = vcmask 64512   ;;  %v234_v14 = vld [vmem:[%s1961_s1 + $0x8] sm:$0xff]  ;;  %v247_v15 = vld [vmem:[%s1962_s2 + $0x30] sm:$0xff]  ;;  %vm837_vm1 = vcmask 523264  }
   0xd   : > { %1454 = vset.pattern.permute.xlu1 %v1464_v1  ;;  %1453 = vset.pattern.permute.xlu0 %v1464_v1  ;;  %s219_s30 = scalar_lea.vmem %s1960_s0, %s1392_s27  ;;  %v243_v16 = vld [vmem:[%s1962_s2 + $0x10] sm:$0xff]  ;;  %v244_v18 = vld [vmem:[%s1962_s2 + $0x18] sm:$0xff]  ;;  %v241_v19 = vld [vmem:[%s1962_s2] sm:$0xff]  ;;  %vm1160_vm5 = vcmask 1040384   ;;  %vm1217_vm7 = vcmask 1041409   ;;  %s1969_s19 = smov (!%p221_p4, %s1501_s19), 1 }
   0xe   : > { %276 = vperm.xlu1 %1454, %v246_v2   ;;  %286 = vperm.xlu0 %1453, %v248_v3   ;;  %v226_v6 = vld [vmem:[%s219_s30 + $0x8] sm:$0xff]  ;;  %v228_v7 = vld [vmem:[%s219_s30 + $0x18] sm:$0xff]  ;;  %v225_v8 = vld [vmem:[%s219_s30] sm:$0xff]  ;;  %s1393_s14 = sshll.u32 %s1969_s19, 3 }
   0xf   : > { %344 = vmatprep.subr.mxu0 %v226_v6  ;;  %457 = vmatprep.subr.mxu1 %v228_v7  ;;  %v227_v9 = vld [vmem:[%s219_s30 + $0x10] sm:$0xff]  ;;  %v230_v10 = vld [vmem:[%s219_s30 + $0x28] sm:$0xff]  ;;  %v232_v11 = vld [vmem:[%s219_s30 + $0x38] sm:$0xff]  ;;  %s1948_s17 = scalar_lea.vmem %s1965_s5, %s1393_s14 }
  0x10   : > { %345 = vmatpush1.msra.mxu0 %v225_v8  ;;  %458 = vmatpush1.msra.mxu1 %v227_v9  ;;  %v229_v12 = vld [vmem:[%s219_s30 + $0x20] sm:$0xff]  ;;  %v231_v13 = vld [vmem:[%s219_s30 + $0x30] sm:$0xff]  ;;  %v236_v20 = vld [vmem:[%s1961_s1 + $0x18] sm:$0xff]  ;;  %1332 = vst [vmem:[%s1948_s17 + $0x5] sm:$0x7] %v1463_v0 }
  0x11   : > { %1394 = vmatmul.mubr.msk.f32.vlgmr.msra.gmra.mxu0 %vm289_vm0, %v1523_v5  ;;  %1402 = vmatmul.mubr.msk.f32.vlgmr.msra.gmra.mxu1 %vm289_vm0, %v1523_v5  ;;  %v235_v17 = vld [vmem:[%s1961_s1 + $0x10] sm:$0xff]  ;;  %v242_v21 = vld [vmem:[%s1962_s2 + $0x8] sm:$0xff]  ;;  %v237_v22 = vld [vmem:[%s1961_s1 + $0x20] sm:$0xff] }
  0x12   : > { %271 = vperm.xlu1 %1454, %v245_v4   ;;  %570 = vmatprep.subr.mxu0 %v230_v10  ;;  %v831_v23 = vld [vmem:[%s1964_s4] sm:$0x7]  ;;  %v238_v24 = vld [vmem:[%s1961_s1 + $0x28] sm:$0xff]  ;;  %v239_v25 = vld [vmem:[%s1961_s1 + $0x30] sm:$0xff] }
  0x13   : > { %683 = vmatprep.subr.mxu1 %v232_v11  ;;  %571 = vmatpush1.msra.mxu0 %v229_v12  ;;  %v240_v26 = vld [vmem:[%s1961_s1 + $0x38] sm:$0xff] }
  0x14   : > { %684 = vmatpush1.msra.mxu1 %v231_v13  ;;  %384 = vmatprep.mubr.f32.mxu0 %v1463_v0 }
  0x15   : > { %497 = vmatprep.mubr.f32.mxu1 %v1463_v0  ;;  %1395 = vmatmul.mubr.msk.f32.gmra.mxu0 %vm289_vm0, %v234_v14 }
  0x16   : > { %1403 = vmatmul.mubr.msk.f32.gmra.mxu1 %vm289_vm0, %v234_v14  ;;  %390 = vmatprep.mubr.f32.mxu0 %v1463_v0 }
  0x17   : > { %503 = vmatprep.mubr.f32.mxu1 %v1463_v0  ;;  %281 = vperm.xlu0 %1453, %v247_v15  }
  0x18   : > { %261 = vperm.xlu1 %1454, %v243_v16  }
  0x19   : > { %1396 = vmatmul.mubr.msk.f32.gmra.mxu0 %vm289_vm0, %v235_v17 }
  0x1a   : > { %1404 = vmatmul.mubr.msk.f32.gmra.mxu1 %vm289_vm0, %v235_v17  ;;  %396 = vmatprep.mubr.f32.mxu0 %v1463_v0 }
  0x1b   : > { %509 = vmatprep.mubr.f32.mxu1 %v1463_v0  ;;  %266 = vperm.xlu0 %1453, %v244_v18  }
  0x1c   : > { %251 = vperm.xlu1 %1454, %v241_v19  }
  0x1d   : > { %1397 = vmatmul.mubr.msk.f32.gmra.mxu0 %vm289_vm0, %v236_v20 }
  0x1e   : > { %1405 = vmatmul.mubr.msk.f32.gmra.mxu1 %vm289_vm0, %v236_v20  ;;  %402 = vmatprep.mubr.f32.mxu0 %v1463_v0 }
  0x1f   : > { %515 = vmatprep.mubr.f32.mxu1 %v1463_v0  ;;  %256 = vperm.xlu0 %1453, %v242_v21  }
  0x21   : > { %1398 = vmatmul.mubr.msk.f32.gmra.mxu0 %vm289_vm0, %v237_v22 }
  0x22   : > { %1406 = vmatmul.mubr.msk.f32.gmra.mxu1 %vm289_vm0, %v237_v22  ;;  %408 = vmatprep.mubr.f32.mxu0 %v1463_v0 }
  0x23   : > { %521 = vmatprep.mubr.f32.mxu1 %v1463_v0  ;;  %834 = vperm.xlu0 %1453, %v831_v23  }
  0x25   : > { %1399 = vmatmul.mubr.msk.f32.gmra.mxu0 %vm289_vm0, %v238_v24 }
  0x26   : > { %1407 = vmatmul.mubr.msk.f32.gmra.mxu1 %vm289_vm0, %v238_v24  ;;  %414 = vmatprep.mubr.f32.mxu0 %v1463_v0 }
  0x27   : > { %527 = vmatprep.mubr.f32.mxu1 %v1463_v0 }
  0x29   : > { %1400 = vmatmul.mubr.msk.f32.gmra.mxu0 %vm289_vm0, %v239_v25 }
  0x2a   : > { %1408 = vmatmul.mubr.msk.f32.gmra.mxu1 %vm289_vm0, %v239_v25  ;;  %420 = vmatprep.mubr.f32.mxu0 %v1463_v0 }
  0x2b   : > { %533 = vmatprep.mubr.f32.mxu1 %v1463_v0 }
  0x2d   : > { %1401 = vmatmul.mubr.msk.f32.gmra.mxu0 %vm289_vm0, %v240_v26 }
  0x2e   : > { %1409 = vmatmul.mubr.msk.f32.gmra.mxu1 %vm289_vm0, %v240_v26  ;;  %604 = vmatprep.mubr.f32.mxu0 %v1463_v0 }
  0x2f   : > { %717 = vmatprep.mubr.f32.mxu1 %v1463_v0 }
  0x31   : > { %1410 = vmatmul.mubr.msk.f32.vlgmr.msra.gmra.mxu0 %vm289_vm0, %v1523_v5 }
  0x32   : > { %1418 = vmatmul.mubr.msk.f32.vlgmr.msra.gmra.mxu1 %vm289_vm0, %v1523_v5  ;;  %610 = vmatprep.mubr.f32.mxu0 %v1463_v0 }
  0x33   : > { %723 = vmatprep.mubr.f32.mxu1 %v1463_v0 }
  0x35   : > { %1411 = vmatmul.mubr.msk.f32.gmra.mxu0 %vm289_vm0, %v234_v14 }
  0x36   : > { %1419 = vmatmul.mubr.msk.f32.gmra.mxu1 %vm289_vm0, %v234_v14  ;;  %616 = vmatprep.mubr.f32.mxu0 %v1463_v0 }
  0x37   : > { %729 = vmatprep.mubr.f32.mxu1 %v1463_v0 }
  0x39   : > { %1412 = vmatmul.mubr.msk.f32.gmra.mxu0 %vm289_vm0, %v235_v17 }
  0x3a   : > { %1420 = vmatmul.mubr.msk.f32.gmra.mxu1 %vm289_vm0, %v235_v17  ;;  %622 = vmatprep.mubr.f32.mxu0 %v1463_v0 }
  0x3b   : > { %735 = vmatprep.mubr.f32.mxu1 %v1463_v0 }
  0x3d   : > { %1413 = vmatmul.mubr.msk.f32.gmra.mxu0 %vm289_vm0, %v236_v20 }
  0x3e   : > { %1421 = vmatmul.mubr.msk.f32.gmra.mxu1 %vm289_vm0, %v236_v20  ;;  %628 = vmatprep.mubr.f32.mxu0 %v1463_v0 }
  0x3f   : > { %741 = vmatprep.mubr.f32.mxu1 %v1463_v0 }
  0x41   : > { %1414 = vmatmul.mubr.msk.f32.gmra.mxu0 %vm289_vm0, %v237_v22 }
  0x42   : > { %1422 = vmatmul.mubr.msk.f32.gmra.mxu1 %vm289_vm0, %v237_v22  ;;  %634 = vmatprep.mubr.f32.mxu0 %v1463_v0 }
  0x43   : > { %747 = vmatprep.mubr.f32.mxu1 %v1463_v0 }
  0x45   : > { %1415 = vmatmul.mubr.msk.f32.gmra.mxu0 %vm289_vm0, %v238_v24 }
  0x46   : > { %1423 = vmatmul.mubr.msk.f32.gmra.mxu1 %vm289_vm0, %v238_v24  ;;  %640 = vmatprep.mubr.f32.mxu0 %v1463_v0 }
  0x47   : > { %753 = vmatprep.mubr.f32.mxu1 %v1463_v0 }
  0x49   : > { %1416 = vmatmul.mubr.msk.f32.gmra.mxu0 %vm289_vm0, %v239_v25 }
  0x4a   : > { %1424 = vmatmul.mubr.msk.f32.gmra.mxu1 %vm289_vm0, %v239_v25  ;;  %646 = vmatprep.mubr.f32.mxu0 %v1463_v0 }
  0x4b   : > { %759 = vmatprep.mubr.f32.mxu1 %v1463_v0 }
  0x4d   : > { %1417 = vmatmul.mubr.msk.f32.gmra.mxu0 %vm289_vm0, %v240_v26 }
  0x4e   : > { %1425 = vmatmul.mubr.msk.f32.gmra.mxu1 %vm289_vm0, %v240_v26  ;;  %905 = vmatprep.mubr.f32.mxu0 %v1463_v0 }
  0x4f   : > { %976 = vmatprep.mubr.f32.mxu1 %v1463_v0 }
  0x89   : > { %v1660_v49 = vpop.permute.xlu0 %286  ;;  %v1662_v52 = vpop.permute.xlu1 %276 }
  0x8d   : > { %v1666_v60 = vpop.permute.xlu1 %271 }
  0x92   : > { %v1664_v57 = vpop.permute.xlu0 %281 }
  0x93   : > { %v1690_v21 = vpop.permute.xlu1 %261 }
  0x96   : > { %v1680_v10 = vpop.permute.xlu0 %266 }
  0xd1   : > { %v1632_v27 = vpop.f32.mrf.mxu0  ;;  %v1634_v28 = vpop.f32.mrf.mxu1 }
  0xd3   : > { %v1636_v29 = vpop.f32.mrf.mxu0  ;;  %v1638_v30 = vpop.f32.mrf.mxu1 }
  0xd5   : > { %v1640_v31 = vpop.f32.mrf.mxu0 }
  0xd6   : > { %v1642_v32 = vpop.f32.mrf.mxu1 }
  0xd7   : > { %v1644_v33 = vpop.f32.mrf.mxu0 }
  0xd8   : > { %v1646_v34 = vpop.f32.mrf.mxu1 }
  0xd9   : > { %v1648_v35 = vpop.f32.mrf.mxu0 }
  0xda   : > { %v1650_v36 = vpop.f32.mrf.mxu1 }
  0xdb   : > { %v1652_v37 = vpop.f32.mrf.mxu0 }
  0xdc   : > { %v1654_v38 = vpop.f32.mrf.mxu1 }
  0xdd   : > { %v1656_v39 = vpop.f32.mrf.mxu0 }
  0xde   : > { %v1658_v40 = vpop.f32.mrf.mxu1 }
  0xdf   : > { %v400_v41 = vpop.f32.mrf.mxu0 }
  0xe0   : > { %v513_v42 = vpop.f32.mrf.mxu1 }
  0xe1   : > { %v404_v43 = vpop.f32.mrf.mxu0 }
  0xe2   : > { %v517_v44 = vpop.f32.mrf.mxu1  ;;  %v405_v26 = vadd.f32 %v404_v43, %v1666_v60  ;;  %v399_v43 = vadd.f32 %v1656_v39, %v1680_v10 }
  0xe3   : > { %v406_v45 = vpop.f32.mrf.mxu0 }
  0xe4   : > { %v519_v46 = vpop.f32.mrf.mxu1  ;;  %v407_v22 = vadd.f32 %v406_v45, %v1666_v60  ;;  %v401_v45 = vadd.f32 %v400_v41, %v1680_v10  ;;  %v1710_v41 = vpop.permute.xlu0 %256 }
  0xe5   : > { %v410_v47 = vpop.f32.mrf.mxu0  ;;  %v520_v23 = vadd.f32 %v519_v46, %v1666_v60  ;;  %v514_v46 = vadd.f32 %v513_v42, %v1680_v10  ;;  %v395_v42 = vadd.f32 %v1652_v37, %v1690_v21  ;;  %v1724_v37 = vpop.permute.xlu1 %251 }
  0xe6   : > { %v523_v48 = vpop.f32.mrf.mxu1  ;;  %v411_v15 = vadd.f32 %v410_v47, %v1662_v52  ;;  %v518_v47 = vadd.f32 %v517_v44, %v1666_v60  ;;  %v512_v44 = vadd.f32 %v1658_v40, %v1680_v10  ;;  %v799_v39 = vmax.f32 %v407_v22, 0.0 }
  0xe7   : > { %v412_v50 = vpop.f32.mrf.mxu0  ;;  %v524_v16 = vadd.f32 %v523_v48, %v1662_v52  ;;  %v393_v40 = vadd.f32 %v1648_v35, %v1690_v21  ;;  %v791_v35 = vmax.f32 %v401_v45, 0.0 }
  0xe8   : > { %v525_v51 = vpop.f32.mrf.mxu1  ;;  %v413_v11 = vadd.f32 %v412_v50, %v1662_v52 }
  0xe9   : > { %v416_v53 = vpop.f32.mrf.mxu0  ;;  %v526_v12 = vadd.f32 %v525_v51, %v1662_v52 }
  0xea   : > { %v529_v54 = vpop.f32.mrf.mxu1  ;;  %v417_v6 = vadd.f32 %v416_v53, %v1664_v57 }
  0xeb   : > { %v418_v55 = vpop.f32.mrf.mxu0  ;;  %v530_v7 = vadd.f32 %v529_v54, %v1664_v57  ;;  %v807_v54 = vmax.f32 %v413_v11, 0.0  ;;  %v792_v11 = vmax.f32 %v512_v44, 0.0 }
  0xec   : > { %v531_v56 = vpop.f32.mrf.mxu1  ;;  %v419_v2 = vadd.f32 %v418_v55, %v1664_v57  ;;  %v814_v48 = vmax.f32 %v417_v6, 0.0  ;;  %v809_v55 = vmax.f32 %v526_v12, 0.0  ;;  %v502_v6 = vadd.f32 %v1646_v34, %v1710_v41 }
  0xed   : > { %v422_v58 = vpop.f32.mrf.mxu0  ;;  %v532_v3 = vadd.f32 %v531_v56, %v1664_v57  ;;  %v816_v50 = vmax.f32 %v530_v7, 0.0  ;;  %v806_v56 = vmax.f32 %v411_v15, 0.0  ;;  %v793_v7 = vmax.f32 %v514_v46, 0.0 }
  0xee   : > { %v535_v59 = vpop.f32.mrf.mxu1  ;;  %v423_v61 = vadd.f32 %v422_v58, %v1660_v49  ;;  %v815_v24 = vmax.f32 %v419_v2, 0.0  ;;  %v808_v58 = vmax.f32 %v524_v16, 0.0  ;;  %v798_v2 = vmax.f32 %v405_v26, 0.0 }
  0xef   : > { %v536_v62 = vadd.f32 %v535_v59, %v1660_v49  ;;  %v424_v63 = vpop.f32.mrf.mxu0  ;;  %v817_v25 = vmax.f32 %v532_v3, 0.0  ;;  %v800_v3 = vmax.f32 %v518_v47, 0.0  ;;  %v383_v34 = vadd.f32 %v1636_v29, %v1724_v37 }
  0xf0   : > { %v537_v1 = vpop.f32.mrf.mxu1  ;;  %v425_v4 = vadd.f32 %v424_v63, %v1660_v49  ;;  %v822_v17 = vmax.f32 %v423_v61, 0.0  ;;  %v801_v63 = vmax.f32 %v520_v23, 0.0  ;;  %v496_v15 = vadd.f32 %v1638_v30, %v1724_v37 }
  0xf1   : > { %v538_v5 = vadd.f32 %v537_v1, %v1660_v49  ;;  %v1676_v8 = vpop.f32.mrf.mxu0  ;;  %v824_v18 = vmax.f32 %v536_v62, 0.0  ;;  %v508_v62 = vadd.f32 %v1654_v38, %v1690_v21  ;;  %v506_v1 = vadd.f32 %v1650_v36, %v1690_v21 }
  0xf2   : > { %v1678_v9 = vpop.f32.mrf.mxu1  ;;  %v823_v13 = vmax.f32 %v425_v4, 0.0  ;;  %v389_v38 = vadd.f32 %v1644_v33, %v1710_v41  ;;  %v790_v36 = vmax.f32 %v399_v43, 0.0  ;;  %v500_v33 = vadd.f32 %v1642_v32, %v1710_v41 }
  0xf3   : > { %v825_v14 = vmax.f32 %v538_v5, 0.0  ;;  %v1686_v19 = vpop.f32.mrf.mxu0  ;;  %v783_v16 = vmax.f32 %v395_v42, 0.0  ;;  %v784_v22 = vmax.f32 %v506_v1, 0.0  ;;  %v494_v29 = vadd.f32 %v1634_v28, %v1724_v37 }
  0xf4   : > { %v1688_v20 = vpop.f32.mrf.mxu1  ;;  %857 = vmatprep.subr.mxu0 %v823_v13  ;;  %v775_v32 = vmax.f32 %v389_v38, 0.0  ;;  %v777_v30 = vmax.f32 %v502_v6, 0.0  ;;  %v769_v45 = vmax.f32 %v496_v15, 0.0 }
  0xf5   : > { %928 = vmatprep.subr.mxu1 %v825_v14  ;;  %v1696_v51 = vpop.f32.mrf.mxu0  ;;  %858 = vmatpush1.msra.mxu0 %v822_v17  ;;  %v387_v14 = vadd.f32 %v1640_v31, %v1710_v41  ;;  %v785_v17 = vmax.f32 %v508_v62, 0.0  ;;  %v381_v31 = vadd.f32 %v1632_v27, %v1724_v37 }
  0xf6   : > { %v1698_v53 = vpop.f32.mrf.mxu1  ;;  %929 = vmatpush1.msra.mxu1 %v824_v18  ;;  %859 = vmatprep.subr.mxu0 %v815_v24  ;;  %v782_v18 = vmax.f32 %v393_v40, 0.0 }
  0xf7   : > { %930 = vmatprep.subr.mxu1 %v817_v25  ;;  %v1706_v59 = vpop.f32.mrf.mxu0  ;;  %860 = vmatpush1.msra.mxu0 %v814_v48  ;;  %v774_v47 = vmax.f32 %v387_v14, 0.0  ;;  %v776_v48 = vmax.f32 %v500_v33, 0.0  ;;  %v766_v28 = vmax.f32 %v381_v31, 0.0 }
  0xf8   : > { %v1708_v61 = vpop.f32.mrf.mxu1  ;;  %931 = vmatpush1.msra.mxu1 %v816_v50  ;;  %861 = vmatprep.subr.mxu0 %v807_v54  ;;  %v767_v50 = vmax.f32 %v383_v34, 0.0  ;;  %v768_v54 = vmax.f32 %v494_v29, 0.0 }
  0xf9   : > { %932 = vmatprep.subr.mxu1 %v809_v55  ;;  %v1720_v4 = vpop.f32.mrf.mxu0  ;;  %862 = vmatpush1.msra.mxu0 %v806_v56  ;;  %v1757_v55 = vld [vmem:[%s1963_s3] sm:$0x7] }
  0xfa   : > { %v1722_v5 = vpop.f32.mrf.mxu1  ;;  %933 = vmatpush1.msra.mxu1 %v808_v58  ;;  %863 = vmatprep.subr.mxu0 %v799_v39 }
  0xfb   : > { %934 = vmatprep.subr.mxu1 %v801_v63  ;;  %v1730_v12 = vpop.f32.mrf.mxu0  ;;  %864 = vmatpush1.msra.mxu0 %v798_v2 }
  0xfc   : > { %v1732_v13 = vpop.f32.mrf.mxu1  ;;  %935 = vmatpush1.msra.mxu1 %v800_v3  ;;  %865 = vmatprep.subr.mxu0 %v791_v35 }
  0xfd   : > { %936 = vmatprep.subr.mxu1 %v793_v7  ;;  %v1742_v23 = vpop.f32.mrf.mxu0  ;;  %866 = vmatpush1.msra.mxu0 %v790_v36 }
  0xfe   : > { %v1744_v24 = vpop.f32.mrf.mxu1  ;;  %937 = vmatpush1.msra.mxu1 %v792_v11  ;;  %867 = vmatprep.subr.mxu0 %v783_v16 }
  0xff   : > { %938 = vmatprep.subr.mxu1 %v785_v17  ;;  %v1750_v25 = vpop.f32.mrf.mxu0  ;;  %868 = vmatpush1.msra.mxu0 %v782_v18 }
 0x100   : > { %v1752_v26 = vpop.f32.mrf.mxu1  ;;  %939 = vmatpush1.msra.mxu1 %v784_v22  ;;  %869 = vmatprep.subr.mxu0 %v775_v32 }
 0x101   : > { %940 = vmatprep.subr.mxu1 %v777_v30  ;;  %v630_v27 = vpop.f32.mrf.mxu0  ;;  %870 = vmatpush1.msra.mxu0 %v774_v47 }
 0x102   : > { %v743_v46 = vpop.f32.mrf.mxu1  ;;  %941 = vmatpush1.msra.mxu1 %v776_v48  ;;  %871 = vmatprep.subr.mxu0 %v767_v50 }
 0x103   : > { %942 = vmatprep.subr.mxu1 %v769_v45  ;;  %v632_v43 = vpop.f32.mrf.mxu0  ;;  %872 = vmatpush1.msra.mxu0 %v766_v28  ;;  %v744_v45 = vadd.f32 %v743_v46, %v1666_v60 }
 0x104   : > { %v745_v44 = vpop.f32.mrf.mxu1  ;;  %943 = vmatpush1.msra.mxu1 %v768_v54  ;;  %1426 = vmatmul.mubr.msk.f32.vlgmr.msra.gmra.mxu0 %vm837_vm1, %v1757_v55  ;;  %v633_v47 = vadd.f32 %v632_v43, %v1666_v60  ;;  %v740_v43 = vadd.f32 %v1752_v26, %v1680_v10  ;;  %v734_v26 = vadd.f32 %v1732_v13, %v1690_v21 }
 0x105   : > { %1427 = vmatmul.mubr.msk.f32.vlgmr.msra.gmra.mxu1 %vm837_vm1, %v1757_v55  ;;  %v636_v56 = vpop.f32.mrf.mxu0  ;;  %1047 = vmatprep.mubr.f32.mxu0 %v1463_v0  ;;  %v728_v13 = vadd.f32 %v1708_v61, %v1710_v41  ;;  %v722_v61 = vadd.f32 %v1688_v20, %v1724_v37 }
 0x106   : > { %v749_v58 = vpop.f32.mrf.mxu1  ;;  %1118 = vmatprep.mubr.f32.mxu1 %v1463_v0  ;;  %v637_v31 = vadd.f32 %v636_v56, %v1662_v52 }
 0x107   : > { %v638_v42 = vpop.f32.mrf.mxu0  ;;  %v750_v29 = vadd.f32 %v749_v58, %v1662_v52  ;;  %v625_v58 = vadd.f32 %v1742_v23, %v1680_v10  ;;  %v619_v23 = vadd.f32 %v1720_v4, %v1690_v21  ;;  %v613_v4 = vadd.f32 %v1696_v51, %v1710_v41 }
 0x108   : > { %v751_v62 = vpop.f32.mrf.mxu1  ;;  %v639_v16 = vadd.f32 %v638_v42, %v1662_v52  ;;  %v803_v42 = vmax.f32 %v633_v47, 0.0  ;;  %v607_v51 = vadd.f32 %v1676_v8, %v1724_v37 }
 0x109   : > { %v642_v39 = vpop.f32.mrf.mxu0  ;;  %v752_v17 = vadd.f32 %v751_v62, %v1662_v52  ;;  %v627_v52 = vadd.f32 %v1750_v25, %v1680_v10  ;;  %v812_v46 = vmax.f32 %v750_v29, 0.0  ;;  %v621_v25 = vadd.f32 %v1730_v12, %v1690_v21 }
 0x10a   : > { %v755_v63 = vpop.f32.mrf.mxu1  ;;  %v643_v34 = vadd.f32 %v642_v39, %v1664_v57  ;;  %v811_v56 = vmax.f32 %v639_v16, 0.0  ;;  %v804_v39 = vmax.f32 %v744_v45, 0.0  ;;  %v615_v12 = vadd.f32 %v1706_v59, %v1710_v41 }
 0x10b   : > { %v644_v40 = vpop.f32.mrf.mxu0  ;;  %v756_v15 = vadd.f32 %v755_v63, %v1664_v57  ;;  %v795_v63 = vmax.f32 %v627_v52, 0.0  ;;  %v609_v59 = vadd.f32 %v1686_v19, %v1724_v37  ;;  %v778_v19 = vmax.f32 %v613_v4, 0.0 }
 0x10c   : > { %v757_v1 = vpop.f32.mrf.mxu1  ;;  %v645_v36 = vadd.f32 %v644_v40, %v1664_v57  ;;  %v818_v28 = vmax.f32 %v643_v34, 0.0  ;;  %v797_v40 = vmax.f32 %v740_v43, 0.0  ;;  %v770_v8 = vmax.f32 %v607_v51, 0.0 }
 0x10d   : > { %v648_v2 = vpop.f32.mrf.mxu0  ;;  %v758_v11 = vadd.f32 %v757_v1, %v1664_v57  ;;  %v631_v57 = vadd.f32 %v630_v27, %v1666_v60  ;;  %v820_v54 = vmax.f32 %v756_v15, 0.0  ;;  %v810_v27 = vmax.f32 %v637_v31, 0.0 }
 0x10e   : > { %v761_v3 = vpop.f32.mrf.mxu1  ;;  %v649_v38 = vadd.f32 %v648_v2, %v1660_v49  ;;  %v819_v48 = vmax.f32 %v645_v36, 0.0  ;;  %v787_v2 = vmax.f32 %v621_v25, 0.0  ;;  %v773_v36 = vmax.f32 %v722_v61, 0.0 }
 0x10f   : > { %v762_v6 = vadd.f32 %v761_v3, %v1660_v49  ;;  %v650_v35 = vpop.f32.mrf.mxu0  ;;  %v821_v50 = vmax.f32 %v758_v11, 0.0  ;;  %v789_v3 = vmax.f32 %v734_v26, 0.0  ;;  %v1135_v34 = vstv %s1430_s13 }
 0x110   : > { %v763_v7 = vpop.f32.mrf.mxu1  ;;  %v651_v14 = vadd.f32 %v650_v35, %v1660_v49  ;;  %v826_v32 = vmax.f32 %v649_v38, 0.0  ;;  %v781_v35 = vmax.f32 %v728_v13, 0.0 }
 0x111   : > { %v764_v33 = vadd.f32 %v763_v7, %v1660_v49  ;;  %v828_v30 = vmax.f32 %v762_v6, 0.0  ;;  %v746_v49 = vadd.f32 %v745_v44, %v1666_v60  ;;  %v813_v44 = vmax.f32 %v752_v17, 0.0  ;;  %v1818_v17 = vpop.permute.xlu0 %834 }
 0x112   : > { %v827_v18 = vmax.f32 %v651_v14, 0.0  ;;  %v738_v60 = vadd.f32 %v1744_v24, %v1680_v10  ;;  %v732_v10 = vadd.f32 %v1722_v5, %v1690_v21  ;;  %v802_v24 = vmax.f32 %v631_v57, 0.0 }
 0x113   : > { %v829_v22 = vmax.f32 %v764_v33, 0.0  ;;  %v805_v62 = vmax.f32 %v746_v49, 0.0  ;;  %v726_v21 = vadd.f32 %v1698_v53, %v1710_v41  ;;  %v794_v5 = vmax.f32 %v625_v58, 0.0 }
 0x114   : > { %999 = vmatprep.subr.mxu0 %v827_v18  ;;  %v796_v1 = vmax.f32 %v738_v60, 0.0  ;;  %v720_v53 = vadd.f32 %v1678_v9, %v1724_v37  ;;  %v786_v41 = vmax.f32 %v619_v23, 0.0  ;;  %v788_v38 = vmax.f32 %v732_v10, 0.0 }
 0x115   : > { %1070 = vmatprep.subr.mxu1 %v829_v22  ;;  %1000 = vmatpush1.msra.mxu0 %v826_v32  ;;  %v779_v6 = vmax.f32 %v615_v12, 0.0  ;;  %v780_v20 = vmax.f32 %v726_v21, 0.0  ;;  %v771_v7 = vmax.f32 %v609_v59, 0.0  ;;  %v1125_v9 = vlaneseq }
 0x116   : > { %1071 = vmatpush1.msra.mxu1 %v828_v30  ;;  %1001 = vmatprep.subr.mxu0 %v819_v48  ;;  %v772_v11 = vmax.f32 %v720_v53, 0.0 }
 0x117   : > { %1072 = vmatprep.subr.mxu1 %v821_v50  ;;  %1002 = vmatpush1.msra.mxu0 %v818_v28  ;;  %v1126_v37 = vand.u32 127, %v1125_v9 }
 0x118   : > { %1073 = vmatpush1.msra.mxu1 %v820_v54  ;;  %1003 = vmatprep.subr.mxu0 %v811_v56 }
 0x119   : > { %1074 = vmatprep.subr.mxu1 %v813_v44  ;;  %1004 = vmatpush1.msra.mxu0 %v810_v27  ;;  %v1127_v33 = vadd.s32 128, %v1126_v37  ;;  %v1136_v18 = vadd.s32 %v1135_v34, %v1126_v37  ;;  %v1128_v22 = vadd.s32 256, %v1126_v37  ;;  %v1129_v32 = vadd.s32 384, %v1126_v37 }
 0x11a   : > { %1075 = vmatpush1.msra.mxu1 %v812_v46  ;;  %1005 = vmatprep.subr.mxu0 %v803_v42  ;;  %v1130_v28 = vadd.s32 512, %v1126_v37  ;;  %v1132_v54 = vadd.s32 768, %v1126_v37  ;;  %v1131_v52 = vadd.s32 640, %v1126_v37  ;;  %v1133_v46 = vadd.s32 896, %v1126_v37 }
 0x11b   : > { %1076 = vmatprep.subr.mxu1 %v805_v62  ;;  %1006 = vmatpush1.msra.mxu0 %v802_v24  ;;  %v1137_v16 = vadd.s32 %v1135_v34, %v1127_v33  ;;  %vm1144_vm3 = vcmp.lt.s32.totalorder %v1136_v18, 2000  ;;  %v1138_v30 = vadd.s32 %v1135_v34, %v1128_v22  ;;  %v1139_v50 = vadd.s32 %v1135_v34, %v1129_v32 }
 0x11c   : > { %1077 = vmatpush1.msra.mxu1 %v804_v39  ;;  %1007 = vmatprep.subr.mxu0 %v795_v63  ;;  %v1140_v60 = vadd.s32 %v1135_v34, %v1130_v28  ;;  %v1828_v27 = vadd.s32 %v1135_v34, %v1132_v54  ;;  %v1830_v25 = vadd.s32 %v1135_v34, %v1131_v52 }
 0x11d   : > { %1078 = vmatprep.subr.mxu1 %v797_v40  ;;  %1008 = vmatpush1.msra.mxu0 %v794_v5  ;;  %vm1145_vm2 = vcmp.lt.s32.totalorder %v1137_v16, 2000  ;;  %vm1146_vm4 = vcmp.lt.s32.totalorder %v1138_v30, 2000  ;;  %vm1147_vm6 = vcmp.lt.s32.totalorder %v1139_v50, 2000  ;;  %v1838_v12 = vadd.s32 %v1135_v34, %v1133_v46 }
 0x11e   : > { %1079 = vmatpush1.msra.mxu1 %v796_v1  ;;  %1009 = vmatprep.subr.mxu0 %v787_v2  ;;  %vm1148_vm8 = vcmp.lt.s32.totalorder %v1140_v60, 2000  ;;  %vm1150_vm9 = vcmp.lt.s32.totalorder %v1828_v27, 2000  ;;  %vm1149_vm10 = vcmp.lt.s32.totalorder %v1830_v25, 2000 }
 0x11f   : > { %1080 = vmatprep.subr.mxu1 %v789_v3  ;;  %1010 = vmatpush1.msra.mxu0 %v786_v41  ;;  %vm1151_vm11 = vcmp.lt.s32.totalorder %v1838_v12, 2000 }
 0x120   : > { %1081 = vmatpush1.msra.mxu1 %v788_v38  ;;  %1011 = vmatprep.subr.mxu0 %v779_v6 }
 0x121   : > { %1082 = vmatprep.subr.mxu1 %v781_v35  ;;  %1012 = vmatpush1.msra.mxu0 %v778_v19 }
 0x122   : > { %1083 = vmatpush1.msra.mxu1 %v780_v20  ;;  %1013 = vmatprep.subr.mxu0 %v771_v7 }
 0x123   : > { %1084 = vmatprep.subr.mxu1 %v773_v36  ;;  %1014 = vmatpush1.msra.mxu0 %v770_v8 }
 0x124   : > { %1085 = vmatpush1.msra.mxu1 %v772_v11  ;;  %1428 = vmatmul.mubr.msk.f32.vlgmr.msra.gmra.mxu0 %vm837_vm1, %v1757_v55 }
 0x125   : > { %1429 = vmatmul.mubr.msk.f32.vlgmr.msra.gmra.mxu1 %vm837_vm1, %v1757_v55 }
 0x1c4   : > { %v907_v14 = vpop.f32.mrf.mxu0 }
 0x1c5   : > { %v908_v29 = vadd.f32 %v907_v14, %v1818_v17  ;;  %v978_v55 = vpop.f32.mrf.mxu1 }
 0x1c6   : > { %v909_v15 = vpop.f32.mrf.mxu0  ;;  %v979_v48 = vadd.f32 %v978_v55, %v1818_v17 }
 0x1c7   : > { %v910_v31 = vadd.f32 %v909_v15, %v1818_v17  ;;  %v1266_v49 = vsel %vm1144_vm3, %v908_v29, 0.0  ;;  %v980_v45 = vpop.f32.mrf.mxu1  ;;  %v1152_v26 = vsel %vm1144_vm3, %v908_v29, inf  ;;  %v1185_v42 = vsel %vm1144_vm3, %v908_v29, -inf }
 0x1c8   : > { %v1282_v43 = vrot.slane %v1266_v49, 2  ;;  %v1268_v56 = vsel %vm1146_vm4, %v979_v48, 0.0  ;;  %v981_v44 = vadd.f32 %v980_v45, %v1818_v17  ;;  %v1154_v39 = vsel %vm1146_vm4, %v979_v48, inf }
 0x1c9   : > { %v1267_v47 = vsel %vm1145_vm2, %v910_v31, 0.0  ;;  %v1284_v23 = vrot.slane %v1268_v56, 2  ;;  %v1841_v13 = vsel %vm1160_vm5, %v1152_v26, inf  ;;  %v1844_v63 = vsel %vm1160_vm5, %v1185_v42, -inf }
 0x1ca   : > { %v1283_v57 = vrot.slane %v1267_v47, 2  ;;  %v1298_v62 = vsel %vm1160_vm5, %v1282_v43, 0.0  ;;  %v1269_v24 = vsel %vm1147_vm6, %v981_v44, 0.0  ;;  %v1847_v40 = vsel %vm1217_vm7, %v1152_v26, inf }
 0x1cb   : > { %v1187_v4 = vsel %vm1146_vm4, %v979_v48, -inf  ;;  %v1301_v21 = vsel %vm1160_vm5, %v1284_v23, 0.0  ;;  %v1153_v5 = vsel %vm1145_vm2, %v910_v31, inf  ;;  %v1186_v1 = vsel %vm1145_vm2, %v910_v31, -inf }
 0x1cc   : > { %v1299_v58 = vsel %vm1160_vm5, %v1283_v57, 0.0  ;;  %v1285_v59 = vrot.slane %v1269_v24, 2  ;;  %v1855_v61 = vsel %vm1217_vm7, %v1185_v42, -inf  ;;  %v1858_v2 = vsel %vm1160_vm5, %v1154_v39, inf }
 0x1cd   : > { %v1300_v10 = vadd.f32 %v1299_v58, %v1298_v62  ;;  %v1155_v3 = vsel %vm1147_vm6, %v981_v44, inf  ;;  %v1862_v53 = vsel %vm1160_vm5, %v1187_v4, -inf  ;;  %v1865_v41 = vsel %vm1217_vm7, %v1154_v39, inf }
 0x1ce   : > { %v1868_v38 = vsel %vm1217_vm7, %v1187_v4, -inf  ;;  %v1188_v6 = vsel %vm1147_vm6, %v981_v44, -inf  ;;  %v1162_v35 = vsel %vm1160_vm5, %v1153_v5, inf  ;;  %v1194_v19 = vsel %vm1160_vm5, %v1186_v1, -inf }
 0x1cf   : > { %v1302_v51 = vadd.f32 %v1301_v21, %v1300_v10  ;;  %v1875_v20 = vsel %vm1217_vm7, %v1153_v5, inf  ;;  %v1878_v7 = vsel %vm1217_vm7, %v1186_v1, -inf  ;;  %v1164_v11 = vsel %vm1160_vm5, %v1155_v3, inf }
 0x1d0   : > { %v1303_v9 = vsel %vm1160_vm5, %v1285_v59, 0.0  ;;  %v1196_v33 = vsel %vm1160_vm5, %v1188_v6, -inf  ;;  %v1221_v34 = vsel %vm1217_vm7, %v1155_v3, inf  ;;  %v1887_v15 = vsel %vm1217_vm7, %v1188_v6, -inf }
 0x1d1   : > { %v1304_v16 = vadd.f32 %v1303_v9, %v1302_v51 }
 0x1e4   : > { %v1049_v36 = vpop.f32.mrf.mxu0 }
 0x1e5   : > { %v1120_v8 = vpop.f32.mrf.mxu1  ;;  %v1050_v37 = vadd.f32 %v1049_v36, %v1818_v17 }
 0x1e6   : > { %v1121_v14 = vadd.f32 %v1120_v8, %v1818_v17  ;;  %v1051_v32 = vpop.f32.mrf.mxu0 }
 0x1e7   : > { %v1156_v18 = vsel %vm1148_vm8, %v1050_v37, inf  ;;  %v1189_v22 = vsel %vm1148_vm8, %v1050_v37, -inf  ;;  %v1270_v31 = vsel %vm1148_vm8, %v1050_v37, 0.0  ;;  %v1122_v48 = vpop.f32.mrf.mxu1  ;;  %v1052_v56 = vadd.f32 %v1051_v32, %v1818_v17 }
 0x1e8   : > { %v1158_v29 = vsel %vm1150_vm9, %v1121_v14, inf  ;;  %v1165_v55 = vsel %vm1160_vm5, %v1156_v18, inf  ;;  %v1197_v30 = vsel %vm1160_vm5, %v1189_v22, -inf  ;;  %v1222_v47 = vsel %vm1217_vm7, %v1156_v18, inf }
 0x1e9   : > { %v1246_v49 = vsel %vm1217_vm7, %v1189_v22, -inf  ;;  %v1286_v50 = vrot.slane %v1270_v31, 2  ;;  %v1169_v57 = vsel %vm1160_vm5, %v1158_v29, inf  ;;  %v1191_v45 = vsel %vm1150_vm9, %v1121_v14, -inf }
 0x1ea   : > { %v1226_v28 = vsel %vm1217_vm7, %v1158_v29, inf  ;;  %v1201_v54 = vsel %vm1160_vm5, %v1191_v45, -inf  ;;  %v1250_v52 = vsel %vm1217_vm7, %v1191_v45, -inf  ;;  %v1272_v43 = vsel %vm1150_vm9, %v1121_v14, 0.0 }
 0x1eb   : > { %v1305_v44 = vsel %vm1160_vm5, %v1286_v50, 0.0  ;;  %v1288_v58 = vrot.slane %v1272_v43, 2  ;;  %v1123_v60 = vadd.f32 %v1122_v48, %v1818_v17  ;;  %v1198_v46 = vmax.f32 %v1844_v63, %v1197_v30 }
 0x1ec   : > { %v1157_v26 = vsel %vm1149_vm10, %v1052_v56, inf  ;;  %v1190_v42 = vsel %vm1149_vm10, %v1052_v56, -inf  ;;  %v1271_v62 = vsel %vm1149_vm10, %v1052_v56, 0.0  ;;  %v1202_v27 = vmax.f32 %v1862_v53, %v1201_v54 }
 0x1ed   : > { %v1167_v23 = vsel %vm1160_vm5, %v1157_v26, inf  ;;  %v1199_v10 = vsel %vm1160_vm5, %v1190_v42, -inf  ;;  %v1224_v24 = vsel %vm1217_vm7, %v1157_v26, inf  ;;  %v1248_v17 = vsel %vm1217_vm7, %v1190_v42, -inf }
 0x1ee   : > { %v1287_v39 = vrot.slane %v1271_v62, 2  ;;  %v1159_v63 = vsel %vm1151_vm11, %v1123_v60, inf  ;;  %v1192_v4 = vsel %vm1151_vm11, %v1123_v60, -inf  ;;  %v1200_v21 = vmax.f32 %v1194_v19, %v1199_v10 }
 0x1ef   : > { %v1171_v25 = vsel %vm1160_vm5, %v1159_v63, inf  ;;  %v1203_v5 = vsel %vm1160_vm5, %v1192_v4, -inf  ;;  %v1228_v1 = vsel %vm1217_vm7, %v1159_v63, inf  ;;  %v1252_v59 = vsel %vm1217_vm7, %v1192_v4, -inf }
 0x1f0   : > { %v1204_v3 = vmax.f32 %v1196_v33, %v1203_v5  ;;  %v1205_v51 = vmax.f32 %v1198_v46, %v1200_v21  ;;  %v1166_v53 = vmin.f32 %v1841_v13, %v1165_v55  ;;  %v1168_v6 = vmin.f32 %v1162_v35, %v1167_v23 }
 0x1f1   : > { %v1170_v36 = vmin.f32 %v1858_v2, %v1169_v57  ;;  %v1172_v8 = vmin.f32 %v1164_v11, %v1171_v25  ;;  %v1223_v9 = vmin.f32 %v1847_v40, %v1222_v47  ;;  %v1225_v19 = vmin.f32 %v1875_v20, %v1224_v24 }
 0x1f2   : > { %v1206_v37 = vmax.f32 %v1202_v27, %v1204_v3  ;;  %v1173_v14 = vmin.f32 %v1166_v53, %v1168_v6  ;;  %v1227_v18 = vmin.f32 %v1865_v41, %v1226_v28  ;;  %v1229_v22 = vmin.f32 %v1221_v34, %v1228_v1 }
 0x1f3   : > { %v1174_v31 = vmin.f32 %v1170_v36, %v1172_v8  ;;  %v1230_v29 = vmin.f32 %v1223_v9, %v1225_v19  ;;  %v1247_v33 = vmax.f32 %v1855_v61, %v1246_v49  ;;  %v1249_v32 = vmax.f32 %v1878_v7, %v1248_v17 }
 0x1f4   : > { %v1207_v13 = vmax.f32 %v1205_v51, %v1206_v37  ;;  %v1231_v35 = vmin.f32 %v1227_v18, %v1229_v22  ;;  %v1251_v2 = vmax.f32 %v1868_v38, %v1250_v52  ;;  %v1253_v11 = vmax.f32 %v1887_v15, %v1252_v59 }
 0x1f5   : > { %v1175_v40 = vmin.f32 %v1173_v14, %v1174_v31  ;;  %v1254_v55 = vmax.f32 %v1247_v33, %v1249_v32  ;;  %v1273_v20 = vsel %vm1151_vm11, %v1123_v60, 0.0  ;;  %v1306_v30 = vadd.f32 %v1305_v44, %v1304_v16 }
 0x1f6   : > { %1208 = vmax.xlane.f32.xlu0 %v1207_v13  ;;  %v1255_v41 = vmax.f32 %v1251_v2, %v1253_v11  ;;  %v1307_v61 = vsel %vm1160_vm5, %v1287_v39, 0.0  ;;  %v1289_v7 = vrot.slane %v1273_v20, 2  ;;  %v1232_v47 = vmin.f32 %v1230_v29, %v1231_v35 }
 0x1f7   : > { %1176 = vmin.xlane.f32.xlu1 %v1175_v40  ;;  %v1308_v34 = vadd.f32 %v1307_v61, %v1306_v30  ;;  %v1309_v38 = vsel %vm1160_vm5, %v1288_v58, 0.0 }
 0x1f8   : > { %v1256_v49 = vmax.f32 %v1254_v55, %v1255_v41  ;;  %v1311_v12 = vsel %vm1160_vm5, %v1289_v7, 0.0 }
 0x1f9   : > { %v1310_v15 = vadd.f32 %v1309_v38, %v1308_v34 }
 0x1fa   : > { %1233 = vmin.xlane.f32.xlu0 %v1232_v47 }
 0x1fb   : > { %1257 = vmax.xlane.f32.xlu1 %v1256_v49  ;;  %v1312_v48 = vadd.f32 %v1311_v12, %v1310_v15 }
 0x1fe   : > { %1313 = vadd.xlane.f32.xlu0 %v1312_v48 }
 0x27f   : > { %v1209_v16 = vpop.xlane.xlu0 %1208 }
 0x280   : > { %v1210_v50 = vrot.slane %v1209_v16, 4  ;;  %v1177_v57 = vpop.xlane.xlu1 %1176 }
 0x281   : > { %v1178_v45 = vrot.slane %v1177_v57, 4 }
 0x282   : > { %v1211_v28 = vmax.f32 %v1209_v16, %v1210_v50 }
 0x283   : > { %v1179_v54 = vmin.f32 %v1177_v57, %v1178_v45  ;;  %v1234_v52 = vpop.xlane.xlu0 %1233 }
 0x284   : > { %v1212_v43 = vrot.slane %v1211_v28, 2  ;;  %v1235_v56 = vrot.slane %v1234_v52, 4  ;;  %v1258_v44 = vpop.xlane.xlu1 %1257 }
 0x285   : > { %v1180_v58 = vrot.slane %v1179_v54, 2  ;;  %v1259_v60 = vrot.slane %v1258_v44, 4 }
 0x286   : > { %v1236_v46 = vmin.f32 %v1234_v52, %v1235_v56  ;;  %v1213_v26 = vmax.f32 %v1211_v28, %v1212_v43 }
 0x287   : > { %v1260_v42 = vmax.f32 %v1258_v44, %v1259_v60  ;;  %v1314_v62 = vpop.xlane.xlu0 %1313  ;;  %v1181_v27 = vmin.f32 %v1179_v54, %v1180_v58 }
 0x288   : > { %v1237_v23 = vrot.slane %v1236_v46, 2  ;;  %v1315_v10 = vrot.slane %v1314_v62, 4  ;;  %v1214_v0 = vrot.slane %v1213_v26, 1 }
 0x289   : > { %v1261_v24 = vrot.slane %v1260_v42, 2  ;;  %v1182_v17 = vrot.slane %v1181_v27, 1 }
 0x28a   : > { %v1316_v39 = vadd.f32 %v1315_v10, %v1314_v62  ;;  %v1215_v63 = vmax.f32 %v1213_v26, %v1214_v0  ;;  %v1238_v4 = vmin.f32 %v1236_v46, %v1237_v23 }
 0x28b   : > { %v1262_v21 = vmax.f32 %v1260_v42, %v1261_v24  ;;  %v1183_v25 = vmin.f32 %v1181_v27, %v1182_v17 }
 0x28c   : > { %v1317_v5 = vrot.slane %v1316_v39, 2  ;;  %v1239_v1 = vrot.slane %v1238_v4, 1 }
 0x28d   : > { %1433 = vpush %v1183_v25  ;;  %v1263_v59 = vrot.slane %v1262_v21, 1 }
 0x28e   : > { %v1318_v3 = vadd.f32 %v1317_v5, %v1316_v39  ;;  %1435 = vpush %v1215_v63  ;;  %v1240_v51 = vmin.f32 %v1238_v4, %v1239_v1 }
 0x28f   : > { %v1264_v53 = vmax.f32 %v1262_v21, %v1263_v59 }
 0x290   : > { %1437 = vpush %v1240_v51  ;;  %v1319_v6 = vrot.slane %v1318_v3, 1 }
 0x291   : > { %1439 = vpush %v1264_v53 }
 0x292   : > { %v1320_v36 = vadd.f32 %v1319_v6, %v1318_v3 }
 0x294   : > { %1441 = vpush %v1320_v36 }
 0x2be   : > { %s1434_s19 = spop %1433 }
 0x2bf   : > { %v1322_v8 = vstv %s1434_s19  ;;  %s1436_s20 = spop %1435 }
 0x2c0   : > { %1323 = vst [vmem:[%s1948_s17] sm:$0x1] %v1322_v8  ;;  %v1324_v9 = vstv %s1436_s20 }
 0x2c1   : > { %1325 = vst [vmem:[%s1948_s17 + $0x1] sm:$0x1] %v1324_v9  ;;  %s1438_s21 = spop %1437 }
 0x2c2   : > { %v1326_v19 = vstv %s1438_s21  ;;  %s1440_s22 = spop %1439 }
 0x2c3   : > { %1327 = vst [vmem:[%s1948_s17 + $0x2] sm:$0x1] %v1326_v19  ;;  %v1328_v37 = vstv %s1440_s22 }
 0x2c4   : > { %1329 = vst [vmem:[%s1948_s17 + $0x3] sm:$0x1] %v1328_v37 }
 0x2c5   : > { %s1442_s23 = spop %1441 }
 0x2c6   : > { %v1330_v14 = vstv %s1442_s23 }
 0x2c7   : > { %1331 = vst [vmem:[%s1948_s17 + $0x4] sm:$0x1] %v1330_v14 }
 0x2c8 PF: > { %s15_s18 = sadd.s32 1, %s1461_s18  }
 0x2c9   : > { %p12_p5 = scmp.ge.s32.totalorder %s15_s18, 4  }
 0x2cb   :  { %14 = sbr.rel (!%p12_p5) target bundleno = 1 (0x1), region = 70 }

// kernel: fd_net_forward.3
= control target key start
LH: loop header
LB: loop body
LE: loop exit
PB: predicated region body
PF: predicated region fallthrough
CT: control target
= control target key end

     0   :  { %11 = vsyncpa [#allocation3], 0  ;;  %s1716_s21 = smov 0   ;;  %s2178_s0 = inlined_call_operand.vmem [shape: f32[8], index: 0, kind: input, shape index: {}]   ;;  %s2179_s1 = inlined_call_operand.vmem [shape: f32[8,2048], index: 1, kind: input, shape index: {}]   ;;  %s2180_s2 = inlined_call_operand.vmem [shape: f32[64,8], index: 2, kind: input, shape index: {}]   ;;  %s2181_s3 = inlined_call_operand.vmem [shape: f32[64,1], index: 3, kind: input, shape index: {}]   ;;  %s2182_s4 = inlined_call_operand.vmem [shape: f32[3,64], index: 4, kind: input, shape index: {}]   ;;  %s2183_s5 = inlined_call_operand.vmem [shape: f32[3,1], index: 5, kind: input, shape index: {}]   ;;  %s2184_s6 = inlined_call_operand.vmem [shape: f32[4,2048], index: 6, kind: output, shape index: {}]  }
   0x1 LB: > { %s1558_s22 = sadd.s32 4294967295, %s1675_s21   ;;  %p1560_p0 = scmp.ge.s32.totalorder %s1675_s21, 1  ;;  %s1675_s21 = sphi %s1716_s21, %s17_s21  }
   0x2   : > { %p179_p1 = scmp.lt.s32.totalorder %s1675_s21, 3  ;;  %s192_s25 = sshll.u32 %s2178_s0, 4  ;;  %s193_s25 = int_to_ptr.vmem [resolvable:$true] %s192_s25 }
   0x3   : > { %p1731_p3 = scmp.eq.s32.totalorder %s1558_s22, 0  ;;  %s1650_s28 = scalar_lea.vmem %s193_s25, 16 }
   0x4   : > { %p1727_p2 = pnand %p1560_p0, %p179_p1  ;;  %p1651_p6 = scmp.ne.s32.totalorder %s193_s25, %s1650_s28 }
   0x5   : > { %p1658_p10 = scmp.lt.s32.totalorder %s193_s25, %s193_s25  ;;  %p1659_p11 = scmp.lt.s32.totalorder %s1650_s28, %s1650_s28 }
   0x6   : > { %p1626_p4 = pneg %p1727_p2 }
   0x7   : > { %p1660_p12 = por %p1659_p11, %p1658_p10 }
   0x8   : > { %p1627_p5 = pnand %p1731_p3, %p1626_p4 }
   0xa   : > { %p1652_p7 = pneg %p1627_p5 }
   0xc   : > { %p1653_p8 = pnand %p1652_p7, %p1651_p6 }
   0xe   : > { %p1654_p9 = pneg %p1653_p8 }
  0x10   : > { %p1661_p13 = pnand %p1660_p12, %p1654_p9 }
  0x12   : > { %1664 = shalt.err (!%p1661_p13)
}
  0x13   : > { %s1677_s29 = smov [#allocation2]   ;;  %226 = sbr.rel (%p1727_p2) target bundleno = 529 (0x211), region = 44 }
  0x14   : > { %1629 = dma.vmem_to_smem (!%p1627_p5), %s193_s25, 16, %s1677_s29, [#allocation3]  }
  0x18   : > { %1670 = dma.done.wait (%p1731_p3), [#allocation3], 16  }
  0x19   : > { %1672 = vsyncadd (%p1731_p3), [#allocation3], 4294967280 }
  0x1a   : > { %232 = sfence }
  0x1b   : > { %s1565_s30 = sshll.u32 %s1558_s22, 3  ;;  %v1189_v0 = vlaneseq  ;;  %v1678_v1 = vmov 1966171168   ;;  %v1679_v3 = vmov 0.0   ;;  %v1680_v4 = vmov 0   ;;  %v290_v5 = vld [vmem:[%s2181_s3 + $0x28] sm:$0xff] }
  0x1c   : > { %p258_p0 = scmp.lt.s32.totalorder %s1565_s30, 15  ;;  %v1187_v2 = vunpack.c.l.s4 %v1678_v1  ;;  %422 = vmatprep.mubr.f32.mxu0 %v1679_v3  ;;  %535 = vmatprep.mubr.f32.mxu1 %v1679_v3  ;;  %v292_v6 = vld [vmem:[%s2181_s3 + $0x38] sm:$0xff]  ;;  %v1762_v9 = vld [vmem:[%s2180_s2] sm:$0xff]  ;;  %vm333_vm0 = vcmask 64512   ;;  %v1776_v26 = vld [vmem:[%s2180_s2 + $0x8] sm:$0xff]  ;;  %vm881_vm1 = vcmask 523264  }
  0x1d   : > { %1645 = vset.pattern.permute.xlu1 %v1680_v4  ;;  %1644 = vset.pattern.permute.xlu0 %v1680_v4  ;;  %v1190_v8 = vshrl.u32 %v1189_v0, 7  ;;  %v289_v29 = vld [vmem:[%s2181_s3 + $0x20] sm:$0xff]  ;;  %v291_v30 = vld [vmem:[%s2181_s3 + $0x30] sm:$0xff]  ;;  %v288_v36 = vld [vmem:[%s2181_s3 + $0x18] sm:$0xff]  ;;  %s1169_s29 = sld [smem:[#allocation2]] }
  0x1e   : > { %s2188_s30 = smov (!%p258_p0, %s1565_s30), 15  ;;  %v1188_v7 = vunpack.c.0.s8 %v1187_v2  ;;  %320 = vperm.xlu1 %1645, %v290_v5   ;;  %330 = vperm.xlu0 %1644, %v292_v6   ;;  %v279_v33 = vld [vmem:[%s2180_s2 + $0x10] sm:$0xff]  ;;  %v280_v38 = vld [vmem:[%s2180_s2 + $0x18] sm:$0xff]  ;;  %v285_v39 = vld [vmem:[%s2181_s3] sm:$0xff]  ;;  %s1606_s7 = sld [smem:[#allocation2 + $0x2]] }
  0x1f   : > { %s1566_s11 = sshll.u32 %s2188_s30, 3  ;;  %s1568_s26 = sshll.u32 %s2188_s30, 2  ;;  %v287_v35 = vld [vmem:[%s2181_s3 + $0x10] sm:$0xff]  ;;  %v286_v40 = vld [vmem:[%s2181_s3 + $0x8] sm:$0xff]  ;;  %v281_v41 = vld [vmem:[%s2180_s2 + $0x20] sm:$0xff] }
  0x20   : > { %s261_s14 = scalar_lea.vmem %s2179_s1, %s1566_s11  ;;  %v1764_v14 = vsub.s32 %v1188_v7, %v1190_v8  ;;  %s1810_s30 = scalar_lea.vmem %s2184_s6, %s1568_s26  ;;  %v875_v42 = vld [vmem:[%s2183_s5] sm:$0x7]  ;;  %v282_v43 = vld [vmem:[%s2180_s2 + $0x28] sm:$0xff]  ;;  %v283_v44 = vld [vmem:[%s2180_s2 + $0x30] sm:$0xff] }
  0x21   : > { %v270_v10 = vld [vmem:[%s261_s14 + $0x8] sm:$0xff]  ;;  %v272_v11 = vld [vmem:[%s261_s14 + $0x18] sm:$0xff]  ;;  %v269_v12 = vld [vmem:[%s261_s14] sm:$0xff]  ;;  %s1605_s8 = sld [smem:[#allocation2 + $0x1]] }
  0x22   : > { %388 = vmatprep.subr.mxu0 %v270_v10  ;;  %501 = vmatprep.subr.mxu1 %v272_v11  ;;  %v1182_v13 = vcombine.low %v269_v12, %v270_v10  ;;  %v271_v15 = vld [vmem:[%s261_s14 + $0x10] sm:$0xff]  ;;  %v273_v16 = vld [vmem:[%s261_s14 + $0x20] sm:$0xff]  ;;  %v274_v17 = vld [vmem:[%s261_s14 + $0x28] sm:$0xff]  ;;  %s1607_s9 = sld [smem:[#allocation2 + $0x3]] }
  0x23   : > { %389 = vmatpush1.msra.mxu0 %v269_v12  ;;  %502 = vmatpush1.msra.mxu1 %v271_v15  ;;  %v1183_v18 = vcombine.low %v271_v15, %v272_v11  ;;  %v1184_v19 = vcombine.low %v273_v16, %v274_v17  ;;  %v275_v20 = vld [vmem:[%s261_s14 + $0x30] sm:$0xff]  ;;  %v276_v21 = vld [vmem:[%s261_s14 + $0x38] sm:$0xff]  ;;  %s1608_s10 = sld [smem:[#allocation2 + $0x4]] }
  0x24   : > { %v1192_v22 = vrot.slane %v1182_v13, %v1764_v14  ;;  %1569 = vmatmul.mubr.msk.f32.vlgmr.msra.gmra.mxu0 %vm333_vm0, %v1762_v9  ;;  %1577 = vmatmul.mubr.msk.f32.vlgmr.msra.gmra.mxu1 %vm333_vm0, %v1762_v9  ;;  %v1185_v23 = vcombine.low %v275_v20, %v276_v21  ;;  %v284_v45 = vld [vmem:[%s2180_s2 + $0x38] sm:$0xff] }
  0x25   : > { %v1199_v24 = vrot.slane %v1183_v18, %v1764_v14  ;;  %614 = vmatprep.subr.mxu0 %v274_v17  ;;  %v1206_v25 = vrot.slane %v1184_v19, %v1764_v14  ;;  %727 = vmatprep.subr.mxu1 %v276_v21 }
  0x26   : > { %v1213_v27 = vrot.slane %v1185_v23, %v1764_v14  ;;  %615 = vmatpush1.msra.mxu0 %v273_v16  ;;  %728 = vmatpush1.msra.mxu1 %v275_v20 }
  0x27   : > { %v1214_v28 = vcombine.low %v1192_v22, %v1199_v24  ;;  %428 = vmatprep.mubr.f32.mxu0 %v1679_v3  ;;  %541 = vmatprep.mubr.f32.mxu1 %v1679_v3 }
  0x28   : > { %v1215_v31 = vcombine.low %v1206_v25, %v1213_v27  ;;  %1570 = vmatmul.mubr.msk.f32.gmra.mxu0 %vm333_vm0, %v1776_v26  ;;  %1578 = vmatmul.mubr.msk.f32.gmra.mxu1 %vm333_vm0, %v1776_v26 }
  0x29   : > { %v1222_v32 = vrot.slane %v1214_v28, %v1764_v14  ;;  %434 = vmatprep.mubr.f32.mxu0 %v1679_v3  ;;  %547 = vmatprep.mubr.f32.mxu1 %v1679_v3 }
  0x2a   : > { %v1229_v34 = vrot.slane %v1215_v31, %v1764_v14  ;;  %315 = vperm.xlu1 %1645, %v289_v29   ;;  %325 = vperm.xlu0 %1644, %v291_v30  }
  0x2c   : > { %v1230_v37 = vcombine.low %v1222_v32, %v1229_v34  ;;  %1571 = vmatmul.mubr.msk.f32.gmra.mxu0 %vm333_vm0, %v279_v33  ;;  %1579 = vmatmul.mubr.msk.f32.gmra.mxu1 %vm333_vm0, %v279_v33 }
  0x2d   : > { %440 = vmatprep.mubr.f32.mxu0 %v1679_v3  ;;  %553 = vmatprep.mubr.f32.mxu1 %v1679_v3 }
  0x2e   : > { %1232 = vst [vmem:[%s1810_s30] ss:$4 sm:$0xff] %v1230_v37  ;;  %305 = vperm.xlu1 %1645, %v287_v35   ;;  %310 = vperm.xlu0 %1644, %v288_v36  }
  0x30   : > { %1572 = vmatmul.mubr.msk.f32.gmra.mxu0 %vm333_vm0, %v280_v38  ;;  %1580 = vmatmul.mubr.msk.f32.gmra.mxu1 %vm333_vm0, %v280_v38 }
  0x31   : > { %446 = vmatprep.mubr.f32.mxu0 %v1679_v3  ;;  %559 = vmatprep.mubr.f32.mxu1 %v1679_v3 }
  0x32   : > { %295 = vperm.xlu1 %1645, %v285_v39   ;;  %300 = vperm.xlu0 %1644, %v286_v40  }
  0x34   : > { %1573 = vmatmul.mubr.msk.f32.gmra.mxu0 %vm333_vm0, %v281_v41  ;;  %1581 = vmatmul.mubr.msk.f32.gmra.mxu1 %vm333_vm0, %v281_v41 }
  0x35   : > { %452 = vmatprep.mubr.f32.mxu0 %v1679_v3  ;;  %565 = vmatprep.mubr.f32.mxu1 %v1679_v3 }
  0x36   : > { %878 = vperm.xlu0 %1644, %v875_v42  }
  0x38   : > { %1574 = vmatmul.mubr.msk.f32.gmra.mxu0 %vm333_vm0, %v282_v43  ;;  %1582 = vmatmul.mubr.msk.f32.gmra.mxu1 %vm333_vm0, %v282_v43 }
  0x39   : > { %458 = vmatprep.mubr.f32.mxu0 %v1679_v3  ;;  %571 = vmatprep.mubr.f32.mxu1 %v1679_v3 }
  0x3c   : > { %1575 = vmatmul.mubr.msk.f32.gmra.mxu0 %vm333_vm0, %v283_v44  ;;  %1583 = vmatmul.mubr.msk.f32.gmra.mxu1 %vm333_vm0, %v283_v44 }
  0x3d   : > { %464 = vmatprep.mubr.f32.mxu0 %v1679_v3  ;;  %577 = vmatprep.mubr.f32.mxu1 %v1679_v3 }
  0x40   : > { %1576 = vmatmul.mubr.msk.f32.gmra.mxu0 %vm333_vm0, %v284_v45  ;;  %1584 = vmatmul.mubr.msk.f32.gmra.mxu1 %vm333_vm0, %v284_v45 }
  0x41   : > { %648 = vmatprep.mubr.f32.mxu0 %v1679_v3  ;;  %761 = vmatprep.mubr.f32.mxu1 %v1679_v3 }
  0x44   : > { %1585 = vmatmul.mubr.msk.f32.vlgmr.msra.gmra.mxu0 %vm333_vm0, %v1762_v9  ;;  %1593 = vmatmul.mubr.msk.f32.vlgmr.msra.gmra.mxu1 %vm333_vm0, %v1762_v9 }
  0x45   : > { %654 = vmatprep.mubr.f32.mxu0 %v1679_v3  ;;  %767 = vmatprep.mubr.f32.mxu1 %v1679_v3 }
  0x48   : > { %1586 = vmatmul.mubr.msk.f32.gmra.mxu0 %vm333_vm0, %v1776_v26  ;;  %1594 = vmatmul.mubr.msk.f32.gmra.mxu1 %vm333_vm0, %v1776_v26 }
  0x49   : > { %660 = vmatprep.mubr.f32.mxu0 %v1679_v3  ;;  %773 = vmatprep.mubr.f32.mxu1 %v1679_v3 }
  0x4c   : > { %1587 = vmatmul.mubr.msk.f32.gmra.mxu0 %vm333_vm0, %v279_v33  ;;  %1595 = vmatmul.mubr.msk.f32.gmra.mxu1 %vm333_vm0, %v279_v33 }
  0x4d   : > { %666 = vmatprep.mubr.f32.mxu0 %v1679_v3  ;;  %779 = vmatprep.mubr.f32.mxu1 %v1679_v3 }
  0x50   : > { %1588 = vmatmul.mubr.msk.f32.gmra.mxu0 %vm333_vm0, %v280_v38  ;;  %1596 = vmatmul.mubr.msk.f32.gmra.mxu1 %vm333_vm0, %v280_v38 }
  0x51   : > { %672 = vmatprep.mubr.f32.mxu0 %v1679_v3  ;;  %785 = vmatprep.mubr.f32.mxu1 %v1679_v3 }
  0x54   : > { %1589 = vmatmul.mubr.msk.f32.gmra.mxu0 %vm333_vm0, %v281_v41  ;;  %1597 = vmatmul.mubr.msk.f32.gmra.mxu1 %vm333_vm0, %v281_v41 }
  0x55   : > { %678 = vmatprep.mubr.f32.mxu0 %v1679_v3  ;;  %791 = vmatprep.mubr.f32.mxu1 %v1679_v3 }
  0x58   : > { %1590 = vmatmul.mubr.msk.f32.gmra.mxu0 %vm333_vm0, %v282_v43  ;;  %1598 = vmatmul.mubr.msk.f32.gmra.mxu1 %vm333_vm0, %v282_v43 }
  0x59   : > { %684 = vmatprep.mubr.f32.mxu0 %v1679_v3  ;;  %797 = vmatprep.mubr.f32.mxu1 %v1679_v3 }
  0x5c   : > { %1591 = vmatmul.mubr.msk.f32.gmra.mxu0 %vm333_vm0, %v283_v44  ;;  %1599 = vmatmul.mubr.msk.f32.gmra.mxu1 %vm333_vm0, %v283_v44 }
  0x5d   : > { %690 = vmatprep.mubr.f32.mxu0 %v1679_v3  ;;  %803 = vmatprep.mubr.f32.mxu1 %v1679_v3 }
  0x60   : > { %1592 = vmatmul.mubr.msk.f32.gmra.mxu0 %vm333_vm0, %v284_v45  ;;  %1600 = vmatmul.mubr.msk.f32.gmra.mxu1 %vm333_vm0, %v284_v45 }
  0x61   : > { %949 = vmatprep.mubr.f32.mxu0 %v1679_v3  ;;  %1020 = vmatprep.mubr.f32.mxu1 %v1679_v3 }
  0x99   : > { %v1923_v5 = vpop.permute.xlu0 %330  ;;  %v1925_v8 = vpop.permute.xlu1 %320 }
  0xa5   : > { %v1927_v13 = vpop.permute.xlu0 %325  ;;  %v1929_v17 = vpop.permute.xlu1 %315 }
  0xa9   : > { %v1943_v30 = vpop.permute.xlu0 %310  ;;  %v1953_v41 = vpop.permute.xlu1 %305 }
  0xe4   : > { %v1895_v46 = vpop.f32.mrf.mxu0  ;;  %v1897_v47 = vpop.f32.mrf.mxu1 }
  0xe6   : > { %v1899_v48 = vpop.f32.mrf.mxu0  ;;  %v1901_v49 = vpop.f32.mrf.mxu1 }
  0xe8   : > { %v1903_v50 = vpop.f32.mrf.mxu0  ;;  %v1905_v51 = vpop.f32.mrf.mxu1 }
  0xea   : > { %v1907_v52 = vpop.f32.mrf.mxu0  ;;  %v1909_v53 = vpop.f32.mrf.mxu1 }
  0xec   : > { %v1911_v54 = vpop.f32.mrf.mxu0  ;;  %v1913_v55 = vpop.f32.mrf.mxu1 }
  0xee   : > { %v1915_v56 = vpop.f32.mrf.mxu0  ;;  %v1917_v57 = vpop.f32.mrf.mxu1 }
  0xf0   : > { %v1919_v58 = vpop.f32.mrf.mxu0  ;;  %v1921_v59 = vpop.f32.mrf.mxu1 }
  0xf2   : > { %v444_v60 = vpop.f32.mrf.mxu0  ;;  %v557_v61 = vpop.f32.mrf.mxu1 }
  0xf4   : > { %v448_v62 = vpop.f32.mrf.mxu0  ;;  %v561_v63 = vpop.f32.mrf.mxu1 }
  0xf6   : > { %v450_v0 = vpop.f32.mrf.mxu0  ;;  %v563_v1 = vpop.f32.mrf.mxu1 }
  0xf7   : > { %v451_v42 = vadd.f32 %v450_v0, %v1929_v17  ;;  %v564_v43 = vadd.f32 %v563_v1, %v1929_v17  ;;  %v445_v0 = vadd.f32 %v444_v60, %v1943_v30  ;;  %v558_v1 = vadd.f32 %v557_v61, %v1943_v30  ;;  %v1973_v60 = vpop.permute.xlu0 %300 }
  0xf8   : > { %v454_v2 = vpop.f32.mrf.mxu0  ;;  %v567_v4 = vpop.f32.mrf.mxu1  ;;  %v439_v61 = vadd.f32 %v1915_v56, %v1953_v41 }
  0xf9   : > { %v455_v35 = vadd.f32 %v454_v2, %v1925_v8  ;;  %v568_v36 = vadd.f32 %v567_v4, %v1925_v8  ;;  %v449_v2 = vadd.f32 %v448_v62, %v1929_v17  ;;  %v562_v4 = vadd.f32 %v561_v63, %v1929_v17  ;;  %v1987_v56 = vpop.permute.xlu1 %295 }
  0xfa   : > { %v456_v6 = vpop.f32.mrf.mxu0  ;;  %v569_v7 = vpop.f32.mrf.mxu1  ;;  %v443_v62 = vadd.f32 %v1919_v58, %v1943_v30  ;;  %v556_v63 = vadd.f32 %v1921_v59, %v1943_v30  ;;  %v843_v58 = vmax.f32 %v451_v42, 0.0  ;;  %v437_v59 = vadd.f32 %v1911_v54, %v1953_v41 }
  0xfb   : > { %v457_v31 = vadd.f32 %v456_v6, %v1925_v8  ;;  %v570_v32 = vadd.f32 %v569_v7, %v1925_v8  ;;  %v835_v54 = vmax.f32 %v445_v0, 0.0 }
  0xfc   : > { %v460_v9 = vpop.f32.mrf.mxu0  ;;  %v573_v10 = vpop.f32.mrf.mxu1  ;;  %v826_v42 = vmax.f32 %v437_v59, 0.0 }
  0xfd   : > { %v461_v26 = vadd.f32 %v460_v9, %v1927_v13  ;;  %v574_v27 = vadd.f32 %v573_v10, %v1927_v13 }
  0xfe   : > { %v462_v11 = vpop.f32.mrf.mxu0  ;;  %v575_v12 = vpop.f32.mrf.mxu1 }
  0xff   : > { %v463_v22 = vadd.f32 %v462_v11, %v1927_v13  ;;  %v576_v23 = vadd.f32 %v575_v12, %v1927_v13  ;;  %v858_v6 = vmax.f32 %v461_v26, 0.0  ;;  %v860_v7 = vmax.f32 %v574_v27, 0.0 }
 0x100   : > { %v466_v15 = vpop.f32.mrf.mxu0  ;;  %v579_v16 = vpop.f32.mrf.mxu1  ;;  %v851_v11 = vmax.f32 %v457_v31, 0.0  ;;  %v853_v12 = vmax.f32 %v570_v32, 0.0  ;;  %v546_v27 = vadd.f32 %v1909_v53, %v1973_v60  ;;  %v837_v31 = vmax.f32 %v558_v1, 0.0 }
 0x101   : > { %v467_v18 = vadd.f32 %v466_v15, %v1923_v5  ;;  %v580_v19 = vadd.f32 %v579_v16, %v1923_v5  ;;  %v859_v44 = vmax.f32 %v463_v22, 0.0  ;;  %v861_v45 = vmax.f32 %v576_v23, 0.0 }
 0x102   : > { %v468_v20 = vpop.f32.mrf.mxu0  ;;  %v581_v21 = vpop.f32.mrf.mxu1  ;;  %v850_v15 = vmax.f32 %v455_v35, 0.0  ;;  %v852_v16 = vmax.f32 %v568_v36, 0.0  ;;  %v550_v22 = vadd.f32 %v1913_v55, %v1953_v41  ;;  %v842_v23 = vmax.f32 %v449_v2, 0.0 }
 0x103   : > { %v469_v24 = vadd.f32 %v468_v20, %v1923_v5  ;;  %v582_v25 = vadd.f32 %v581_v21, %v1923_v5  ;;  %v866_v37 = vmax.f32 %v467_v18, 0.0  ;;  %v868_v38 = vmax.f32 %v580_v19, 0.0 }
 0x104   : > { %v1939_v28 = vpop.f32.mrf.mxu0  ;;  %v1941_v29 = vpop.f32.mrf.mxu1  ;;  %v552_v20 = vadd.f32 %v1917_v57, %v1953_v41  ;;  %v845_v21 = vmax.f32 %v564_v43, 0.0  ;;  %v433_v57 = vadd.f32 %v1907_v52, %v1973_v60  ;;  %v834_v55 = vmax.f32 %v443_v62, 0.0  ;;  %v2020_v62 = vld [vmem:[%s2182_s4] sm:$0x7] }
 0x105   : > { %v867_v33 = vmax.f32 %v469_v24, 0.0  ;;  %v869_v34 = vmax.f32 %v582_v25, 0.0  ;;  %v844_v24 = vmax.f32 %v562_v4, 0.0  ;;  %v836_v32 = vmax.f32 %v556_v63, 0.0 }
 0x106   : > { %v1949_v39 = vpop.f32.mrf.mxu0  ;;  %v1951_v40 = vpop.f32.mrf.mxu1  ;;  %v431_v35 = vadd.f32 %v1903_v50, %v1973_v60  ;;  %v544_v52 = vadd.f32 %v1905_v51, %v1973_v60  ;;  %v427_v53 = vadd.f32 %v1899_v48, %v1987_v56  ;;  %v540_v36 = vadd.f32 %v1901_v49, %v1987_v56 }
 0x107   : > { %901 = vmatprep.subr.mxu0 %v867_v33  ;;  %972 = vmatprep.subr.mxu1 %v869_v34  ;;  %v828_v43 = vmax.f32 %v550_v22, 0.0  ;;  %v425_v50 = vadd.f32 %v1895_v46, %v1987_v56  ;;  %v538_v48 = vadd.f32 %v1897_v47, %v1987_v56  ;;  %v819_v51 = vmax.f32 %v433_v57, 0.0 }
 0x108   : > { %v1959_v9 = vpop.f32.mrf.mxu0  ;;  %v1961_v10 = vpop.f32.mrf.mxu1  ;;  %902 = vmatpush1.msra.mxu0 %v866_v37  ;;  %973 = vmatpush1.msra.mxu1 %v868_v38  ;;  %v827_v37 = vmax.f32 %v439_v61, 0.0  ;;  %v829_v38 = vmax.f32 %v552_v20, 0.0  ;;  %v821_v49 = vmax.f32 %v546_v27, 0.0  ;;  %v811_v0 = vmax.f32 %v427_v53, 0.0 }
 0x109   : > { %903 = vmatprep.subr.mxu0 %v859_v44  ;;  %974 = vmatprep.subr.mxu1 %v861_v45  ;;  %v813_v1 = vmax.f32 %v540_v36, 0.0  ;;  %v810_v47 = vmax.f32 %v425_v50, 0.0 }
 0x10a   : > { %v1969_v18 = vpop.f32.mrf.mxu0  ;;  %v1971_v19 = vpop.f32.mrf.mxu1  ;;  %904 = vmatpush1.msra.mxu0 %v858_v6  ;;  %975 = vmatpush1.msra.mxu1 %v860_v7  ;;  %v818_v6 = vmax.f32 %v431_v35, 0.0  ;;  %v820_v7 = vmax.f32 %v544_v52, 0.0 }
 0x10b   : > { %905 = vmatprep.subr.mxu0 %v851_v11  ;;  %976 = vmatprep.subr.mxu1 %v853_v12  ;;  %v812_v12 = vmax.f32 %v538_v48, 0.0 }
 0x10c   : > { %v1983_v25 = vpop.f32.mrf.mxu0  ;;  %v1985_v26 = vpop.f32.mrf.mxu1  ;;  %906 = vmatpush1.msra.mxu0 %v850_v15  ;;  %977 = vmatpush1.msra.mxu1 %v852_v16 }
 0x10d   : > { %907 = vmatprep.subr.mxu0 %v843_v58  ;;  %978 = vmatprep.subr.mxu1 %v845_v21 }
 0x10e   : > { %v1993_v33 = vpop.f32.mrf.mxu0  ;;  %v1995_v34 = vpop.f32.mrf.mxu1  ;;  %908 = vmatpush1.msra.mxu0 %v842_v23  ;;  %979 = vmatpush1.msra.mxu1 %v844_v24 }
 0x10f   : > { %909 = vmatprep.subr.mxu0 %v835_v54  ;;  %980 = vmatprep.subr.mxu1 %v837_v31 }
 0x110   : > { %v2005_v44 = vpop.f32.mrf.mxu0  ;;  %v2007_v45 = vpop.f32.mrf.mxu1  ;;  %910 = vmatpush1.msra.mxu0 %v834_v55  ;;  %981 = vmatpush1.msra.mxu1 %v836_v32 }
 0x111   : > { %911 = vmatprep.subr.mxu0 %v827_v37  ;;  %982 = vmatprep.subr.mxu1 %v829_v38 }
 0x112   : > { %v2013_v2 = vpop.f32.mrf.mxu0  ;;  %v2015_v4 = vpop.f32.mrf.mxu1  ;;  %912 = vmatpush1.msra.mxu0 %v826_v42  ;;  %983 = vmatpush1.msra.mxu1 %v828_v43 }
 0x113   : > { %913 = vmatprep.subr.mxu0 %v819_v51  ;;  %984 = vmatprep.subr.mxu1 %v821_v49 }
 0x114   : > { %v674_v46 = vpop.f32.mrf.mxu0  ;;  %v787_v11 = vpop.f32.mrf.mxu1  ;;  %914 = vmatpush1.msra.mxu0 %v818_v6  ;;  %985 = vmatpush1.msra.mxu1 %v820_v7 }
 0x115   : > { %915 = vmatprep.subr.mxu0 %v811_v0  ;;  %986 = vmatprep.subr.mxu1 %v813_v1 }
 0x116   : > { %v676_v63 = vpop.f32.mrf.mxu0  ;;  %v789_v15 = vpop.f32.mrf.mxu1  ;;  %916 = vmatpush1.msra.mxu0 %v810_v47  ;;  %987 = vmatpush1.msra.mxu1 %v812_v12  ;;  %v788_v47 = vadd.f32 %v787_v11, %v1929_v17 }
 0x117   : > { %1601 = vmatmul.mubr.msk.f32.vlgmr.msra.gmra.mxu0 %vm881_vm1, %v2020_v62  ;;  %1602 = vmatmul.mubr.msk.f32.vlgmr.msra.gmra.mxu1 %vm881_vm1, %v2020_v62  ;;  %v677_v7 = vadd.f32 %v676_v63, %v1929_v17  ;;  %v784_v63 = vadd.f32 %v2015_v4, %v1943_v30  ;;  %v778_v4 = vadd.f32 %v1995_v34, %v1953_v41 }
 0x118   : > { %v680_v16 = vpop.f32.mrf.mxu0  ;;  %v793_v61 = vpop.f32.mrf.mxu1  ;;  %1091 = vmatprep.mubr.f32.mxu0 %v1679_v3  ;;  %1162 = vmatprep.mubr.f32.mxu1 %v1679_v3  ;;  %v772_v34 = vadd.f32 %v1971_v19, %v1973_v60  ;;  %v766_v19 = vadd.f32 %v1951_v40, %v1987_v56 }
 0x119   : > { %v681_v48 = vadd.f32 %v680_v16, %v1925_v8  ;;  %v794_v51 = vadd.f32 %v793_v61, %v1925_v8  ;;  %v669_v61 = vadd.f32 %v2005_v44, %v1943_v30  ;;  %v663_v44 = vadd.f32 %v1983_v25, %v1953_v41 }
 0x11a   : > { %v682_v20 = vpop.f32.mrf.mxu0  ;;  %v795_v58 = vpop.f32.mrf.mxu1  ;;  %v657_v25 = vadd.f32 %v1959_v9, %v1973_v60  ;;  %v651_v9 = vadd.f32 %v1939_v28, %v1987_v56 }
 0x11b   : > { %v683_v38 = vadd.f32 %v682_v20, %v1925_v8  ;;  %v796_v42 = vadd.f32 %v795_v58, %v1925_v8  ;;  %v671_v8 = vadd.f32 %v2013_v2, %v1943_v30  ;;  %v856_v11 = vmax.f32 %v794_v51, 0.0 }
 0x11c   : > { %v686_v21 = vpop.f32.mrf.mxu0  ;;  %v799_v59 = vpop.f32.mrf.mxu1  ;;  %v665_v2 = vadd.f32 %v1993_v33, %v1953_v41  ;;  %v847_v58 = vmax.f32 %v677_v7, 0.0  ;;  %v659_v33 = vadd.f32 %v1969_v18, %v1973_v60  ;;  %v653_v18 = vadd.f32 %v1949_v39, %v1987_v56 }
 0x11d   : > { %v687_v36 = vadd.f32 %v686_v21, %v1927_v13  ;;  %v800_v37 = vadd.f32 %v799_v59, %v1927_v13  ;;  %v855_v16 = vmax.f32 %v683_v38, 0.0  ;;  %v848_v59 = vmax.f32 %v788_v47, 0.0 }
 0x11e   : > { %v688_v22 = vpop.f32.mrf.mxu0  ;;  %v801_v23 = vpop.f32.mrf.mxu1  ;;  %v822_v39 = vmax.f32 %v657_v25, 0.0  ;;  %v814_v28 = vmax.f32 %v651_v9, 0.0 }
 0x11f   : > { %v689_v32 = vadd.f32 %v688_v22, %v1927_v13  ;;  %v802_v35 = vadd.f32 %v801_v23, %v1927_v13  ;;  %v675_v13 = vadd.f32 %v674_v46, %v1929_v17  ;;  %v862_v12 = vmax.f32 %v687_v36, 0.0 }
 0x120   : > { %v692_v24 = vpop.f32.mrf.mxu0  ;;  %v805_v57 = vpop.f32.mrf.mxu1  ;;  %v864_v20 = vmax.f32 %v800_v37, 0.0  ;;  %v854_v46 = vmax.f32 %v681_v48, 0.0  ;;  %v839_v22 = vmax.f32 %v671_v8, 0.0  ;;  %v841_v23 = vmax.f32 %v784_v63, 0.0 }
 0x121   : > { %v693_v27 = vadd.f32 %v692_v24, %v1923_v5  ;;  %v806_v54 = vadd.f32 %v805_v57, %v1923_v5  ;;  %v863_v0 = vmax.f32 %v689_v32, 0.0  ;;  %v865_v1 = vmax.f32 %v802_v35, 0.0 }
 0x122   : > { %v694_v31 = vpop.f32.mrf.mxu0  ;;  %v807_v55 = vpop.f32.mrf.mxu1  ;;  %v831_v57 = vmax.f32 %v665_v2, 0.0  ;;  %v815_v32 = vmax.f32 %v653_v18, 0.0  ;;  %v817_v35 = vmax.f32 %v766_v19, 0.0 }
 0x123   : > { %v695_v52 = vadd.f32 %v694_v31, %v1923_v5  ;;  %v808_v53 = vadd.f32 %v807_v55, %v1923_v5  ;;  %v870_v49 = vmax.f32 %v693_v27, 0.0  ;;  %v872_v6 = vmax.f32 %v806_v54, 0.0 }
 0x124   : > { %v790_v5 = vadd.f32 %v789_v15, %v1929_v17  ;;  %v857_v15 = vmax.f32 %v796_v42, 0.0  ;;  %v782_v17 = vadd.f32 %v2007_v45, %v1943_v30  ;;  %v776_v30 = vadd.f32 %v1985_v26, %v1953_v41 }
 0x125   : > { %v871_v43 = vmax.f32 %v695_v52, 0.0  ;;  %v873_v50 = vmax.f32 %v808_v53, 0.0  ;;  %v846_v45 = vmax.f32 %v675_v13, 0.0  ;;  %v770_v41 = vadd.f32 %v1961_v10, %v1973_v60  ;;  %v2080_v53 = vpop.permute.xlu0 %878 }
 0x126   : > { %v849_v21 = vmax.f32 %v790_v5, 0.0  ;;  %v838_v26 = vmax.f32 %v669_v61, 0.0  ;;  %v840_v24 = vmax.f32 %v782_v17, 0.0  ;;  %v833_v27 = vmax.f32 %v778_v4, 0.0 }
 0x127   : > { %1043 = vmatprep.subr.mxu0 %v871_v43  ;;  %1114 = vmatprep.subr.mxu1 %v873_v50  ;;  %v764_v10 = vadd.f32 %v1941_v29, %v1987_v56  ;;  %v830_v60 = vmax.f32 %v663_v44, 0.0  ;;  %v832_v54 = vmax.f32 %v776_v30, 0.0  ;;  %v823_v31 = vmax.f32 %v659_v33, 0.0 }
 0x128   : > { %1044 = vmatpush1.msra.mxu0 %v870_v49  ;;  %1115 = vmatpush1.msra.mxu1 %v872_v6  ;;  %v825_v55 = vmax.f32 %v772_v34, 0.0  ;;  %v824_v40 = vmax.f32 %v770_v41, 0.0  ;;  %v2084_v42 = vstv %s1169_s29  ;;  %v2086_v43 = vstv %s1606_s7 }
 0x129   : > { %1045 = vmatprep.subr.mxu0 %v863_v0  ;;  %1116 = vmatprep.subr.mxu1 %v865_v1  ;;  %v816_v52 = vmax.f32 %v764_v10, 0.0  ;;  %v2092_v6 = vstv %s1605_s8  ;;  %v2095_v5 = vstv %s1607_s9  ;;  %v2097_v0 = vstv %s1608_s10 }
 0x12a   : > { %1046 = vmatpush1.msra.mxu0 %v862_v12  ;;  %1117 = vmatpush1.msra.mxu1 %v864_v20 }
 0x12b   : > { %1047 = vmatprep.subr.mxu0 %v855_v16  ;;  %1118 = vmatprep.subr.mxu1 %v857_v15 }
 0x12c   : > { %1048 = vmatpush1.msra.mxu0 %v854_v46  ;;  %1119 = vmatpush1.msra.mxu1 %v856_v11 }
 0x12d   : > { %1049 = vmatprep.subr.mxu0 %v847_v58  ;;  %1120 = vmatprep.subr.mxu1 %v849_v21 }
 0x12e   : > { %1050 = vmatpush1.msra.mxu0 %v846_v45  ;;  %1121 = vmatpush1.msra.mxu1 %v848_v59 }
 0x12f   : > { %1051 = vmatprep.subr.mxu0 %v839_v22  ;;  %1122 = vmatprep.subr.mxu1 %v841_v23 }
 0x130   : > { %1052 = vmatpush1.msra.mxu0 %v838_v26  ;;  %1123 = vmatpush1.msra.mxu1 %v840_v24 }
 0x131   : > { %1053 = vmatprep.subr.mxu0 %v831_v57  ;;  %1124 = vmatprep.subr.mxu1 %v833_v27 }
 0x132   : > { %1054 = vmatpush1.msra.mxu0 %v830_v60  ;;  %1125 = vmatpush1.msra.mxu1 %v832_v54 }
 0x133   : > { %1055 = vmatprep.subr.mxu0 %v823_v31  ;;  %1126 = vmatprep.subr.mxu1 %v825_v55 }
 0x134   : > { %1056 = vmatpush1.msra.mxu0 %v822_v39  ;;  %1127 = vmatpush1.msra.mxu1 %v824_v40 }
 0x135   : > { %1057 = vmatprep.subr.mxu0 %v815_v32  ;;  %1128 = vmatprep.subr.mxu1 %v817_v35 }
 0x136   : > { %1058 = vmatpush1.msra.mxu0 %v814_v28  ;;  %1129 = vmatpush1.msra.mxu1 %v816_v52 }
 0x137   : > { %1603 = vmatmul.mubr.msk.f32.vlgmr.msra.gmra.mxu0 %vm881_vm1, %v2020_v62  ;;  %1604 = vmatmul.mubr.msk.f32.vlgmr.msra.gmra.mxu1 %vm881_vm1, %v2020_v62 }
 0x1d7   : > { %v951_v29 = vpop.f32.mrf.mxu0  ;;  %v1022_v37 = vpop.f32.mrf.mxu1 }
 0x1d8   : > { %v952_v38 = vadd.f32 %v951_v29, %v2080_v53  ;;  %v1023_v49 = vadd.f32 %v1022_v37, %v2080_v53 }
 0x1d9   : > { %v953_v56 = vpop.f32.mrf.mxu0  ;;  %v1024_v48 = vpop.f32.mrf.mxu1 }
 0x1da   : > { %v954_v36 = vadd.f32 %v953_v56, %v2080_v53  ;;  %v1234_v51 = vsub.f32 %v952_v38, %v2084_v42  ;;  %v1320_v7 = vsub.f32 %v952_v38, %v2086_v43  ;;  %v1025_v13 = vadd.f32 %v1024_v48, %v2080_v53 }
 0x1db   : > { %v1236_v20 = vsub.f32 %v1023_v49, %v2084_v42  ;;  %v1322_v8 = vsub.f32 %v1023_v49, %v2086_v43  ;;  %vm1406_vm3 = vcmp.gt.f32.partialorder %v952_v38, %v2097_v0  ;;  %vm1408_vm5 = vcmp.gt.f32.partialorder %v1023_v49, %v2097_v0 }
 0x1dc   : > { %v1235_v62 = vsub.f32 %v954_v36, %v2084_v42  ;;  %v1321_v50 = vsub.f32 %v954_v36, %v2086_v43  ;;  %vm1407_vm2 = vcmp.gt.f32.partialorder %v954_v36, %v2097_v0  ;;  %v1243_v12 = vmul.f32 %v2092_v6, %v1234_v51 }
 0x1dd   : > { %v1329_v63 = vmul.f32 %v2095_v5, %v1320_v7  ;;  %v1612_v15 = vsel %vm1407_vm2, 1.0, %v1679_v3  ;;  %v1237_v61 = vsub.f32 %v1025_v13, %v2084_v42  ;;  %v1323_v46 = vsub.f32 %v1025_v13, %v2086_v43 }
 0x1de   : > { %v1244_v1 = vmul.f32 %v2092_v6, %v1235_v62  ;;  %v1330_v47 = vmul.f32 %v2095_v5, %v1321_v50  ;;  %vm1409_vm4 = vcmp.gt.f32.partialorder %v1025_v13, %v2097_v0  ;;  %v1251_v11 = vfloor.f32 %v1243_v12 }
 0x1df   : > { %v1611_v2 = vsel %vm1406_vm3, 1.0, %v1679_v3  ;;  %v1245_v4 = vmul.f32 %v2092_v6, %v1236_v20  ;;  %v1331_v58 = vmul.f32 %v2095_v5, %v1322_v8  ;;  %v1337_v21 = vfloor.f32 %v1329_v63 }
 0x1e0   : > { %v1252_v16 = vfloor.f32 %v1244_v1  ;;  %v1338_v17 = vfloor.f32 %v1330_v47  ;;  %v1438_v44 = vcombine.low %v1611_v2, %v1612_v15  ;;  %v1246_v45 = vmul.f32 %v2092_v6, %v1237_v61 }
 0x1e1   : > { %v1614_v59 = vsel %vm1409_vm4, 1.0, %v1679_v3  ;;  %v1332_v23 = vmul.f32 %v2095_v5, %v1323_v46  ;;  %v1253_v26 = vfloor.f32 %v1245_v4  ;;  %v1339_v24 = vfloor.f32 %v1331_v58 }
 0x1e2   : > { %v2116_v30 = vcombine.low %v1251_v11, %v1252_v16  ;;  %v2120_v22 = vcombine.low %v1337_v21, %v1338_v17  ;;  %v1613_v18 = vsel %vm1408_vm5, 1.0, %v1679_v3  ;;  %v1448_v57 = vrot.slane %v1438_v44, %v1764_v14 }
 0x1e3   : > { %v1439_v27 = vcombine.low %v1613_v18, %v1614_v59  ;;  %v1254_v54 = vfloor.f32 %v1246_v45  ;;  %v1340_v39 = vfloor.f32 %v1332_v23 }
 0x1e4   : > { %v1277_v60 = vrot.slane %v2116_v30, %v1764_v14  ;;  %v1363_v55 = vrot.slane %v2120_v22, %v1764_v14 }
 0x1e5   : > { %v1455_v56 = vrot.slane %v1439_v27, %v1764_v14  ;;  %v1268_v62 = vcombine.low %v1253_v26, %v1254_v54  ;;  %v1354_v49 = vcombine.low %v1339_v24, %v1340_v39 }
 0x1e7   : > { %v1284_v58 = vrot.slane %v1268_v62, %v1764_v14 }
 0x1f7   : > { %v1093_v33 = vpop.f32.mrf.mxu0  ;;  %v1164_v34 = vpop.f32.mrf.mxu1 }
 0x1f8   : > { %v1094_v25 = vadd.f32 %v1093_v33, %v2080_v53  ;;  %v1165_v41 = vadd.f32 %v1164_v34, %v2080_v53  ;;  %v1299_v34 = vcombine.low %v1277_v60, %v1284_v58 }
 0x1f9   : > { %v1095_v19 = vpop.f32.mrf.mxu0  ;;  %v1166_v29 = vpop.f32.mrf.mxu1 }
 0x1fa   : > { %v1238_v9 = vsub.f32 %v1094_v25, %v2084_v42  ;;  %v1324_v10 = vsub.f32 %v1094_v25, %v2086_v43  ;;  %vm1410_vm6 = vcmp.gt.f32.partialorder %v1094_v25, %v2097_v0  ;;  %v1096_v31 = vadd.f32 %v1095_v19, %v2080_v53 }
 0x1fb   : > { %v1240_v40 = vsub.f32 %v1165_v41, %v2084_v42  ;;  %v1326_v32 = vsub.f32 %v1165_v41, %v2086_v43  ;;  %v1615_v37 = vsel %vm1410_vm6, 1.0, %v1679_v3  ;;  %vm1412_vm8 = vcmp.gt.f32.partialorder %v1165_v41, %v2097_v0 }
 0x1fc   : > { %v1247_v35 = vmul.f32 %v2092_v6, %v1238_v9  ;;  %v1239_v28 = vsub.f32 %v1096_v31, %v2084_v42  ;;  %v1325_v52 = vsub.f32 %v1096_v31, %v2086_v43  ;;  %vm1411_vm7 = vcmp.gt.f32.partialorder %v1096_v31, %v2097_v0 }
 0x1fd   : > { %v1333_v36 = vmul.f32 %v2095_v5, %v1324_v10  ;;  %v1616_v38 = vsel %vm1411_vm7, 1.0, %v1679_v3  ;;  %v1249_v7 = vmul.f32 %v2092_v6, %v1240_v40  ;;  %v1167_v1 = vadd.f32 %v1166_v29, %v2080_v53 }
 0x1fe   : > { %v1248_v50 = vmul.f32 %v2092_v6, %v1239_v28  ;;  %v1334_v48 = vmul.f32 %v2095_v5, %v1325_v52  ;;  %v1440_v51 = vcombine.low %v1615_v37, %v1616_v38  ;;  %v1255_v13 = vfloor.f32 %v1247_v35 }
 0x1ff   : > { %v1335_v47 = vmul.f32 %v2095_v5, %v1326_v32  ;;  %v1341_v8 = vfloor.f32 %v1333_v36  ;;  %v1241_v63 = vsub.f32 %v1167_v1, %v2084_v42  ;;  %v1327_v16 = vsub.f32 %v1167_v1, %v2086_v43 }
 0x200   : > { %v1256_v12 = vfloor.f32 %v1248_v50  ;;  %v1342_v20 = vfloor.f32 %v1334_v48  ;;  %vm1413_vm9 = vcmp.gt.f32.partialorder %v1167_v1, %v2097_v0  ;;  %v1617_v15 = vsel %vm1412_vm8, 1.0, %v1679_v3 }
 0x201   : > { %v1462_v17 = vrot.slane %v1440_v51, %v1764_v14  ;;  %v1618_v46 = vsel %vm1413_vm9, 1.0, %v1679_v3  ;;  %v1250_v11 = vmul.f32 %v2092_v6, %v1241_v63  ;;  %v1336_v2 = vmul.f32 %v2095_v5, %v1327_v16 }
 0x202   : > { %v1269_v61 = vcombine.low %v1255_v13, %v1256_v12  ;;  %v1355_v53 = vcombine.low %v1341_v8, %v1342_v20  ;;  %v1441_v4 = vcombine.low %v1617_v15, %v1618_v46  ;;  %v1370_v42 = vrot.slane %v1354_v49, %v1764_v14 }
 0x203   : > { %v1470_v43 = vcombine.low %v1448_v57, %v1455_v56  ;;  %v1257_v21 = vfloor.f32 %v1249_v7  ;;  %v1343_v0 = vfloor.f32 %v1335_v47  ;;  %v1258_v44 = vfloor.f32 %v1250_v11 }
 0x204   : > { %v1344_v30 = vfloor.f32 %v1336_v2  ;;  %v1469_v45 = vrot.slane %v1441_v4, %v1764_v14  ;;  %v1291_v59 = vrot.slane %v1269_v61, %v1764_v14  ;;  %v1377_v3 = vrot.slane %v1355_v53, %v1764_v14 }
 0x205   : > { %v1270_v33 = vcombine.low %v1257_v21, %v1258_v44  ;;  %v1478_v22 = vrot.slane %v1470_v43, %v1764_v14  ;;  %v1385_v23 = vcombine.high %v1363_v55, %v1370_v42  ;;  %v1307_v57 = vrot.slane %v1299_v34, %v1764_v14 }
 0x206   : > { %v1356_v6 = vcombine.low %v1343_v0, %v1344_v30  ;;  %v1471_v5 = vcombine.low %v1462_v17, %v1469_v45 }
 0x207   : > { %v1298_v25 = vrot.slane %v1270_v33, %v1764_v14  ;;  %v1393_v27 = vrot.slane %v1385_v23, %v1764_v14 }
 0x208   : > { %v1384_v41 = vrot.slane %v1356_v6, %v1764_v14  ;;  %v1485_v26 = vrot.slane %v1471_v5, %v1764_v14 }
 0x209   : > { %v1300_v24 = vcombine.low %v1291_v59, %v1298_v25 }
 0x20a   : > { %v1386_v18 = vcombine.high %v1377_v3, %v1384_v41  ;;  %v1486_v19 = vcombine.high %v1478_v22, %v1485_v26 }
 0x20b   : > { %v1314_v9 = vrot.slane %v1300_v24, %v1764_v14 }
 0x20c   : > { %v1400_v10 = vrot.slane %v1386_v18, %v1764_v14  ;;  %1619 = vst [vmem:[%s1810_s30 + $0x3] ss:$4 sm:$0xff] %v1486_v19 }
 0x20d   : > { %v1315_v60 = vcombine.low %v1307_v57, %v1314_v9 }
 0x20e   : > { %v1401_v54 = vcombine.low %v1393_v27, %v1400_v10 }
 0x20f   : > { %1609 = vst [vmem:[%s1810_s30 + $0x1] ss:$4 sm:$0xff] %v1315_v60 }
 0x210   : > { %1610 = vst [vmem:[%s1810_s30 + $0x2] ss:$4 sm:$0xff] %v1401_v54 }
 0x211 PF: > { %s17_s21 = sadd.s32 1, %s1675_s21  }
 0x212   : > { %p14_p1 = scmp.ge.s32.totalorder %s17_s21, 4  }
 0x214   :  { %16 = sbr.rel (!%p14_p1) target bundleno = 1 (0x1), region = 82 }
 0x219   :  { %1512 = vsyncpa [#allocation3], 1 }
 0x21a   :  { %1514 = vsyncpa [#allocation3 + $0x1], 1 }

</bundles_post_ra>
